<compile_context>
chip_gen: v7x
topology: tpu7x:2x2x1
jax: 0.10.0
libtpu: 0.0.40
codegen_flags: <defaults>
</compile_context>

<pallas_src>
import functools

import jax
import jax.numpy as jnp
import numpy as np
from jax import lax
from jax.experimental import pallas as pl
from jax.experimental.pallas import tpu as pltpu


def bilstm_kernel(ids_ref,       # (T*B,) int32  SMEM   time-major token ids
                  emb_hbm,       # (V, E) f32    HBM    embedding table (pl.ANY)
                  wih_ref,       # (E, 8H) bf16  VMEM   [W_ih_fwd | W_ih_bwd], gates [i,f,o,g]
                  whh_ref,       # (H, 4H) bf16  VMEM   forward W_hh, gates [i,f,o,g]
                  b_ref,         # (1, 8H) f32   VMEM   [b_fwd | b_bwd] (b_ih + b_hh)
                  wlin_ref,      # (2H, Cp) bf16 VMEM
                  blin_ref,      # (1, Cp) f32   VMEM
                  out_ref,       # (B, Cp) f32
                  emb_vmem,      # scratch (T*B, E) f32   gathered embeddings
                  xproj_ref,     # scratch (T*B, 8H) f32  hoisted input projection
                  sem,           # scratch DMA semaphore (1,)
                  *, T, B):
    H = whh_ref.shape[0]
    n_rows = T * B

    # ---- fused nn.Embedding gather: one row DMA per token id ---------------
    # Every copy is the same 512 B, all share one DMA semaphore, so issuing
    # all starts and then draining n_rows waits is exact.  Padded batch rows
    # carry id 0 -> gather row 0; harmless, discarded in the wrapper.
    def row_copy(r):
        return pltpu.make_async_copy(emb_hbm.at[ids_ref[r]], emb_vmem.at[r],
                                     sem.at[0])

    @pl.loop(0, n_rows)
    def _(r):
        row_copy(r).start()

    @pl.loop(0, n_rows)
    def _(r):
        row_copy(r).wait()

    # bf16 MXU operands, f32 accumulation / state / gate math throughout.
    x = emb_vmem[...].astype(wih_ref.dtype)            # (T*B, E) bf16
    whh = whh_ref[...]                                  # hoisted: read once

    # Hoisted input projection for BOTH directions over ALL timesteps in one
    # MXU matmul, biases folded in (one broadcast total).
    xproj_ref[...] = (jnp.dot(x, wih_ref[...], preferred_element_type=jnp.float32)
                      + b_ref[...])                     # (T*B, 8H) f32

    # Gate order [i, f, o, g]: one sigmoid over a contiguous (B, 3H) slab,
    # one tanh over the last H.
    def gates_to_hc(gates, c):
        sig = jax.nn.sigmoid(gates[:, :3 * H])
        i, f, o = sig[:, :H], sig[:, H:2 * H], sig[:, 2 * H:3 * H]
        g = jnp.tanh(gates[:, 3 * H:4 * H])
        c_new = f * c + i * g
        return o * jnp.tanh(c_new), c_new

    h0 = jnp.zeros((B, H), jnp.float32)
    c0 = jnp.zeros((B, H), jnp.float32)

    # Forward recurrence: per step only h @ W_hh (bf16 MXU, f32 acc) plus the
    # precomputed x-projection slice and elementwise gate math.  T is static
    # and small -> full unroll gives the scheduler cross-iteration visibility.
    def fwd_body(t, carry):
        h, c = carry
        gates = (xproj_ref[pl.ds(t * B, B), :4 * H]
                 + jnp.dot(h.astype(whh.dtype), whh,
                           preferred_element_type=jnp.float32))
        return gates_to_hc(gates, c)

    h_fwd, _ = lax.fori_loop(0, T, fwd_body, (h0, c0), unroll=True)

    # Backward-direction output at the last timestep: one step on x[:, T-1]
    # from a zero initial state -> the h @ W_hh_bwd term is exactly zero and
    # the gate input is just the (already computed) input projection slice.
    gates_b = xproj_ref[(T - 1) * B:, 4 * H:]           # static, aligned f32 slice
    h_bwd, _ = gates_to_hc(gates_b, c0)

    # Final linear as a single (B, 2H) @ (2H, Cp); H == 128 so the concat is
    # lane-aligned, Cp == 128 keeps the output store lane-dense / unmasked.
    h_cat = jnp.concatenate([h_fwd, h_bwd], axis=1).astype(wlin_ref.dtype)
    out_ref[...] = (jnp.dot(h_cat, wlin_ref[...], preferred_element_type=jnp.float32)
                    + blin_ref[...])


def prepare_params(params):
    """One-time wrapper-side layout work (NOT per call): gate reorder to
    [i, f, o, g], fwd/bwd input-projection concat, bf16 weight casts, class
    padding to 128 lanes."""
    H = params["whh_f"].shape[0]
    C = params["w_lin"].shape[1]
    Cp = max(128, -(-C // 128) * 128)
    # permutation [i, f, g, o] -> [i, f, o, g] applied to the 4H gate columns
    perm = np.concatenate([np.arange(0, 2 * H), np.arange(3 * H, 4 * H),
                           np.arange(2 * H, 3 * H)])
    bf16 = lambda a: a.astype(jnp.bfloat16)
    reord = lambda a: a[..., perm]

    w_ih = jnp.concatenate([reord(params["wih_f"]), reord(params["wih_b"])], axis=1)
    b = jnp.concatenate([reord(params["b_f"]), reord(params["b_b"])], axis=1)
    w_lin = jnp.pad(params["w_lin"], ((0, 0), (0, Cp - C)))
    b_lin = jnp.pad(params["b_lin"], ((0, 0), (0, Cp - C)))
    return dict(
        emb=params["embedding"].astype(jnp.float32),   # f32 rows -> clean 512 B row DMAs
        w_ih=bf16(w_ih),                               # (E, 8H)
        w_hh=bf16(reord(params["whh_f"])),             # (H, 4H)
        b=b.astype(jnp.float32),                       # (1, 8H)
        w_lin=bf16(w_lin),                             # (2H, Cp)
        b_lin=b_lin.astype(jnp.float32),               # (1, Cp)
        num_classes=C,
    )


def bilstm_forward(text, prep):
    """text: (B, T) int32 token ids -> (B, num_classes) float32 logits."""
    B, T = text.shape
    E = prep["emb"].shape[1]
    H = prep["w_hh"].shape[0]
    Cp = prep["w_lin"].shape[1]
    C = prep["num_classes"]

    # bf16 MXU operands pack 16 sublanes per vreg -> pad batch to 16 rows.
    # Padded rows gather embedding row 0 and run through bounded gate math;
    # they are discarded below (deliberately NOT masked: masking adds VPU work).
    Bp = max(16, -(-B // 16) * 16)
    if Bp != B:
        text = jnp.pad(text, ((0, Bp - B), (0, 0)))

    # time-major flat ids: row t*Bp + b  <->  (batch b, timestep t)
    ids = text.T.reshape(T * Bp).astype(jnp.int32)

    flops = (2 * T * Bp * E * 8 * H          # hoisted input projection (both dirs)
             + 2 * T * Bp * H * 4 * H        # recurrence h @ W_hh
             + 2 * Bp * 2 * H * Cp)          # final linear
    transcendentals = (T + 1) * Bp * 5 * H   # sigmoid/tanh gates + tanh(c)
    bytes_accessed = (4 * T * Bp             # ids
                      + 4 * T * Bp * E       # gathered embedding rows
                      + 2 * (E * 8 * H + H * 4 * H + 2 * H * Cp)   # bf16 weights
                      + 4 * (8 * H + Cp)     # biases
                      + 4 * Bp * Cp)         # output

    vmem = pl.BlockSpec(memory_space=pltpu.MemorySpace.VMEM)
    out = pl.pallas_call(
        functools.partial(bilstm_kernel, T=T, B=Bp),
        out_shape=jax.ShapeDtypeStruct((Bp, Cp), jnp.float32),
        in_specs=[pl.BlockSpec(memory_space=pltpu.MemorySpace.SMEM),  # ids
                  pl.BlockSpec(memory_space=pl.ANY),                  # emb table in HBM
                  vmem, vmem, vmem, vmem, vmem],
        out_specs=vmem,
        scratch_shapes=[pltpu.VMEM((T * Bp, E), jnp.float32),         # gathered emb
                        pltpu.VMEM((T * Bp, 8 * H), jnp.float32),     # xproj
                        pltpu.SemaphoreType.DMA((1,))],
        cost_estimate=pl.CostEstimate(flops=flops,
                                      transcendentals=transcendentals,
                                      bytes_accessed=bytes_accessed),
    )(ids, prep["emb"], prep["w_ih"], prep["w_hh"], prep["b"],
      prep["w_lin"], prep["b_lin"])
    return out[:B, :C]


def init_params(key, vocab_size, num_classes, emb_size, hidden_size):
    H = hidden_size
    ks = jax.random.split(key, 11)
    s = 1.0 / np.sqrt(H)

    def u(k, shape):
        return jax.random.uniform(k, shape, jnp.float32, -s, s)

    return dict(
        embedding=jax.random.normal(ks[0], (vocab_size, emb_size), jnp.float32),
        # pre-transposed LSTM weights (E,4H)/(H,4H); biases are combined b_ih+b_hh
        wih_f=u(ks[1], (emb_size, 4 * H)),
        whh_f=u(ks[2], (H, 4 * H)),
        b_f=u(ks[3], (1, 4 * H)) + u(ks[4], (1, 4 * H)),
        wih_b=u(ks[5], (emb_size, 4 * H)),
        whh_b=u(ks[6], (H, 4 * H)),   # unused for last-step output (zero init state)
        b_b=u(ks[7], (1, 4 * H)) + u(ks[8], (1, 4 * H)),
        w_lin=u(ks[9], (2 * H, num_classes)),
        b_lin=u(ks[10], (1, num_classes)),
    )


def reference_forward(text, params, matmul_dtype=jnp.bfloat16):
    """Pure-JAX reference with identical module semantics (gate order [i,f,g,o]).

    matmul_dtype=bfloat16 mirrors the kernel's precision policy (bf16 MXU
    inputs, f32 accumulation/state); float32 gives the full-precision
    PyTorch-equivalent result for a looser sanity check."""
    emb = jnp.take(params["embedding"], text, axis=0)          # (B, T, E) f32
    B, T, _ = emb.shape
    H = params["whh_f"].shape[0]

    def dot32(a, b):
        return jnp.dot(a.astype(matmul_dtype), b.astype(matmul_dtype),
                       preferred_element_type=jnp.float32)

    def cell(x_t, h, c, wih, whh, b):
        gates = dot32(x_t, wih) + dot32(h, whh) + b
        i = jax.nn.sigmoid(gates[:, 0:H])
        f = jax.nn.sigmoid(gates[:, H:2 * H])
        g = jnp.tanh(gates[:, 2 * H:3 * H])
        o = jax.nn.sigmoid(gates[:, 3 * H:4 * H])
        c_new = f * c + i * g
        return o * jnp.tanh(c_new), c_new

    h = jnp.zeros((B, H), jnp.float32)
    c = jnp.zeros((B, H), jnp.float32)
    for t in range(T):
        h, c = cell(emb[:, t], h, c,
                    params["wih_f"], params["whh_f"], params["b_f"])
    h_fwd = h
    # torch bidirectional: output[:, -1, H:] is the backward LSTM's first step
    # (processing x[:, T-1] from a zero initial state).
    h_bwd, _ = cell(emb[:, T - 1],
                    jnp.zeros((B, H), jnp.float32), jnp.zeros((B, H), jnp.float32),
                    params["wih_b"], params["whh_b"], params["b_b"])
    rnn_last = jnp.concatenate([h_fwd, h_bwd], axis=1)
    return dot32(rnn_last, params["w_lin"]) + params["b_lin"]


if __name__ == "__main__":
    vocab_size, num_classes = 100, 8
    emb_size, hidden_size = 128, 128
    B, T = 4, 8

    key = jax.random.PRNGKey(0)
    kp, kt = jax.random.split(key)
    params = init_params(kp, vocab_size, num_classes, emb_size, hidden_size)
    text = jax.random.randint(kt, (B, T), 0, vocab_size, dtype=jnp.int32)

    prep = prepare_params(params)          # one-time layout work, outside the step
    out = bilstm_forward(text, prep)
    out = jax.block_until_ready(out)
    assert out.shape == (B, num_classes)

    # Tight check against a reference that mirrors the kernel's precision
    # policy (bf16 matmul inputs, f32 accumulation / gate math).
    ref_bf16 = reference_forward(text, params, matmul_dtype=jnp.bfloat16)
    np.testing.assert_allclose(np.asarray(out), np.asarray(ref_bf16),
                               rtol=2e-3, atol=2e-3)

    # Loose sanity check against the full-f32 PyTorch-equivalent math.
    ref_f32 = reference_forward(text, params, matmul_dtype=jnp.float32)
    np.testing.assert_allclose(np.asarray(out), np.asarray(ref_f32),
                               rtol=5e-2, atol=5e-2)

    print("KERNEL_OK")
</pallas_src>

<mosaic_0001>
module attributes {stable_mosaic.version = 11 : i64} {
  func.func @bilstm_kernel(%arg0: memref<128xi32, #tpu.memory_space<smem>>, %arg1: memref<100x128xf32, #tpu.memory_space<any>>, %arg2: memref<128x1024xbf16, #tpu.memory_space<vmem>>, %arg3: memref<128x512xbf16, #tpu.memory_space<vmem>>, %arg4: memref<1x1024xf32, #tpu.memory_space<vmem>>, %arg5: memref<256x128xbf16, #tpu.memory_space<vmem>>, %arg6: memref<1x128xf32, #tpu.memory_space<vmem>>, %arg7: memref<16x128xf32, #tpu.memory_space<vmem>>, %arg8: memref<128x128xf32, #tpu.memory_space<vmem>>, %arg9: memref<128x1024xf32, #tpu.memory_space<vmem>>, %arg10: memref<1x!tpu.dma_semaphore, #tpu.memory_space<semaphore_mem>>) attributes {dimension_semantics = [], scalar_prefetch = 0 : i64, scratch_operands = 3 : i64, tpu.core_type = #tpu.core_type<tc>} {
    %c0_i32 = arith.constant 0 : i32
    %c128_i32 = arith.constant 128 : i32
    %0 = arith.addi %c0_i32, %c128_i32 : i32
    %c1_i32 = arith.constant 1 : i32
    scf.for %arg11 = %c0_i32 to %0 step %c1_i32  : i32 {
      %c1_i32_57 = arith.constant 1 : i32
      %214 = arith.muli %arg11, %c1_i32_57 : i32
      %c0_i32_58 = arith.constant 0 : i32
      %215 = arith.addi %c0_i32_58, %214 : i32
      %216 = arith.index_cast %215 : i32 to index
      %217 = memref.load %arg0[%216] : memref<128xi32, #tpu.memory_space<smem>>
      %c0_i32_59 = arith.constant 0 : i32
      %c0_i32_60 = arith.constant 0 : i32
      %218 = tpu.memref_slice %arg1[%217, %c0_i32_60] : memref<100x128xf32, #tpu.memory_space<any>> -> memref<1x128xf32, #tpu.memory_space<any>>
      %219 = tpu.memref_squeeze %218 : memref<1x128xf32, #tpu.memory_space<any>> -> memref<128xf32, #tpu.memory_space<any>>
      %c0_i32_61 = arith.constant 0 : i32
      %220 = tpu.memref_slice %arg8[%215, %c0_i32_61] : memref<128x128xf32, #tpu.memory_space<vmem>> -> memref<1x128xf32, #tpu.memory_space<vmem>>
      %221 = tpu.memref_squeeze %220 : memref<1x128xf32, #tpu.memory_space<vmem>> -> memref<128xf32, #tpu.memory_space<vmem>>
      %222 = tpu.memref_slice %arg10[%c0_i32_59] : memref<1x!tpu.dma_semaphore, #tpu.memory_space<semaphore_mem>> -> memref<1x!tpu.dma_semaphore, #tpu.memory_space<semaphore_mem>>
      %223 = tpu.memref_squeeze %222 : memref<1x!tpu.dma_semaphore, #tpu.memory_space<semaphore_mem>> -> memref<!tpu.dma_semaphore, #tpu.memory_space<semaphore_mem>>
      tpu.enqueue_dma source(%219 : memref<128xf32, #tpu.memory_space<any>>) target(%221 : memref<128xf32, #tpu.memory_space<vmem>>) target_semaphore(%223 : memref<!tpu.dma_semaphore, #tpu.memory_space<semaphore_mem>>)
    }
    %c128_i32_0 = arith.constant 128 : i32
    %c0_i32_1 = arith.constant 0 : i32
    %c128_i32_2 = arith.constant 128 : i32
    %1 = arith.addi %c0_i32_1, %c128_i32_2 : i32
    %c1_i32_3 = arith.constant 1 : i32
    scf.for %arg11 = %c0_i32_1 to %1 step %c1_i32_3  : i32 {
      %c1_i32_57 = arith.constant 1 : i32
      %214 = arith.muli %arg11, %c1_i32_57 : i32
      %c0_i32_58 = arith.constant 0 : i32
      %215 = arith.addi %c0_i32_58, %214 : i32
      %216 = arith.index_cast %215 : i32 to index
      %217 = memref.load %arg0[%216] : memref<128xi32, #tpu.memory_space<smem>>
      %c0_i32_59 = arith.constant 0 : i32
      %c0_i32_60 = arith.constant 0 : i32
      %218 = tpu.memref_slice %arg1[%217, %c0_i32_60] : memref<100x128xf32, #tpu.memory_space<any>> -> memref<1x128xf32, #tpu.memory_space<any>>
      %219 = tpu.memref_squeeze %218 : memref<1x128xf32, #tpu.memory_space<any>> -> memref<128xf32, #tpu.memory_space<any>>
      %c0_i32_61 = arith.constant 0 : i32
      %220 = tpu.memref_slice %arg8[%215, %c0_i32_61] : memref<128x128xf32, #tpu.memory_space<vmem>> -> memref<1x128xf32, #tpu.memory_space<vmem>>
      %221 = tpu.memref_squeeze %220 : memref<1x128xf32, #tpu.memory_space<vmem>> -> memref<128xf32, #tpu.memory_space<vmem>>
      %222 = tpu.memref_slice %arg10[%c0_i32_59] : memref<1x!tpu.dma_semaphore, #tpu.memory_space<semaphore_mem>> -> memref<1x!tpu.dma_semaphore, #tpu.memory_space<semaphore_mem>>
      %223 = tpu.memref_squeeze %222 : memref<1x!tpu.dma_semaphore, #tpu.memory_space<semaphore_mem>> -> memref<!tpu.dma_semaphore, #tpu.memory_space<semaphore_mem>>
      tpu.wait_dma2 semaphore(%223 : memref<!tpu.dma_semaphore, #tpu.memory_space<semaphore_mem>>) src(%219 : memref<128xf32, #tpu.memory_space<any>>) dst(%221 : memref<128xf32, #tpu.memory_space<vmem>>)
    }
    %c128_i32_4 = arith.constant 128 : i32
    %c0 = arith.constant 0 : index
    %c0_5 = arith.constant 0 : index
    %2 = vector.load %arg8[%c0, %c0_5] : memref<128x128xf32, #tpu.memory_space<vmem>>, vector<128x128xf32>
    %3 = arith.truncf %2 : vector<128x128xf32> to vector<128x128xbf16>
    %c0_6 = arith.constant 0 : index
    %c0_7 = arith.constant 0 : index
    %4 = vector.load %arg3[%c0_6, %c0_7] : memref<128x512xbf16, #tpu.memory_space<vmem>>, vector<128x512xbf16>
    %c0_8 = arith.constant 0 : index
    %c0_9 = arith.constant 0 : index
    %5 = vector.load %arg2[%c0_8, %c0_9] : memref<128x1024xbf16, #tpu.memory_space<vmem>>, vector<128x1024xbf16>
    %cst = arith.constant dense<0.000000e+00> : vector<128x1024xf32>
    %6 = tpu.matmul %3, %5, %cst {dimension_numbers = #tpu.dot_dimension_numbers<[1], [0], [0], [1], [0, 0, 1, 1], [], []>} : vector<128x128xbf16>, vector<128x1024xbf16>, vector<128x1024xf32> -> vector<128x1024xf32>
    %c0_10 = arith.constant 0 : index
    %c0_11 = arith.constant 0 : index
    %7 = vector.load %arg4[%c0_10, %c0_11] : memref<1x1024xf32, #tpu.memory_space<vmem>>, vector<1x1024xf32>
    %8 = vector.broadcast %7 : vector<1x1024xf32> to vector<128x1024xf32>
    %9 = arith.addf %6, %8 : vector<128x1024xf32>
    %c0_12 = arith.constant 0 : index
    %c0_13 = arith.constant 0 : index
    %10 = vector.load %arg9[%c0_12, %c0_13] : memref<128x1024xf32, #tpu.memory_space<vmem>>, vector<128x1024xf32>
    tpu.vector_store %arg9[%c0_12, %c0_13], %9 {strides = array<i32>} : memref<128x1024xf32, #tpu.memory_space<vmem>>, vector<128x1024xf32>,
    %cst_14 = arith.constant 0.000000e+00 : f32
    %11 = vector.broadcast %cst_14 : f32 to vector<16x128xf32>
    %cst_15 = arith.constant 0.000000e+00 : f32
    %12 = vector.broadcast %cst_15 : f32 to vector<16x128xf32>
    %c0_i32_16 = arith.constant 0 : i32
    %c16_i32 = arith.constant 16 : i32
    %13 = arith.muli %c0_i32_16, %c16_i32 : i32
    %14 = arith.index_cast %13 : i32 to index
    %c0_17 = arith.constant 0 : index
    %15 = vector.load %arg9[%14, %c0_17] : memref<128x1024xf32, #tpu.memory_space<vmem>>, vector<16x512xf32>
    %16 = arith.truncf %11 : vector<16x128xf32> to vector<16x128xbf16>
    %cst_18 = arith.constant dense<0.000000e+00> : vector<16x512xf32>
    %17 = tpu.matmul %16, %4, %cst_18 {dimension_numbers = #tpu.dot_dimension_numbers<[1], [0], [0], [1], [0, 0, 1, 1], [], []>} : vector<16x128xbf16>, vector<128x512xbf16>, vector<16x512xf32> -> vector<16x512xf32>
    %18 = arith.addf %15, %17 : vector<16x512xf32>
    %19 = vector.extract_strided_slice %18 {offsets = [0, 0], sizes = [16, 384], strides = [1, 1]} : vector<16x512xf32> to vector<16x384xf32>
    %20 = arith.negf %19 : vector<16x384xf32>
    %21 = math.exp %20 : vector<16x384xf32>
    %cst_19 = arith.constant 1.000000e+00 : f32
    %22 = vector.broadcast %cst_19 : f32 to vector<16x384xf32>
    %23 = arith.addf %22, %21 : vector<16x384xf32>
    %24 = arith.divf %22, %23 : vector<16x384xf32>
    %25 = vector.extract_strided_slice %24 {offsets = [0, 0], sizes = [16, 128], strides = [1, 1]} : vector<16x384xf32> to vector<16x128xf32>
    %26 = vector.extract_strided_slice %24 {offsets = [0, 128], sizes = [16, 128], strides = [1, 1]} : vector<16x384xf32> to vector<16x128xf32>
    %27 = vector.extract_strided_slice %24 {offsets = [0, 256], sizes = [16, 128], strides = [1, 1]} : vector<16x384xf32> to vector<16x128xf32>
    %28 = vector.extract_strided_slice %18 {offsets = [0, 384], sizes = [16, 128], strides = [1, 1]} : vector<16x512xf32> to vector<16x128xf32>
    %29 = math.tanh %28 : vector<16x128xf32>
    %30 = arith.mulf %26, %12 : vector<16x128xf32>
    %31 = arith.mulf %25, %29 : vector<16x128xf32>
    %32 = arith.addf %30, %31 : vector<16x128xf32>
    %33 = math.tanh %32 : vector<16x128xf32>
    %34 = arith.mulf %27, %33 : vector<16x128xf32>
    %c1_i32_20 = arith.constant 1 : i32
    %c16_i32_21 = arith.constant 16 : i32
    %35 = arith.muli %c1_i32_20, %c16_i32_21 : i32
    %36 = arith.index_cast %35 : i32 to index
    %c0_22 = arith.constant 0 : index
    %37 = vector.load %arg9[%36, %c0_22] : memref<128x1024xf32, #tpu.memory_space<vmem>>, vector<16x512xf32>
    %38 = arith.truncf %34 : vector<16x128xf32> to vector<16x128xbf16>
    %cst_23 = arith.constant dense<0.000000e+00> : vector<16x512xf32>
    %39 = tpu.matmul %38, %4, %cst_23 {dimension_numbers = #tpu.dot_dimension_numbers<[1], [0], [0], [1], [0, 0, 1, 1], [], []>} : vector<16x128xbf16>, vector<128x512xbf16>, vector<16x512xf32> -> vector<16x512xf32>
    %40 = arith.addf %37, %39 : vector<16x512xf32>
    %41 = vector.extract_strided_slice %40 {offsets = [0, 0], sizes = [16, 384], strides = [1, 1]} : vector<16x512xf32> to vector<16x384xf32>
    %42 = arith.negf %41 : vector<16x384xf32>
    %43 = math.exp %42 : vector<16x384xf32>
    %cst_24 = arith.constant 1.000000e+00 : f32
    %44 = vector.broadcast %cst_24 : f32 to vector<16x384xf32>
    %45 = arith.addf %44, %43 : vector<16x384xf32>
    %46 = arith.divf %44, %45 : vector<16x384xf32>
    %47 = vector.extract_strided_slice %46 {offsets = [0, 0], sizes = [16, 128], strides = [1, 1]} : vector<16x384xf32> to vector<16x128xf32>
    %48 = vector.extract_strided_slice %46 {offsets = [0, 128], sizes = [16, 128], strides = [1, 1]} : vector<16x384xf32> to vector<16x128xf32>
    %49 = vector.extract_strided_slice %46 {offsets = [0, 256], sizes = [16, 128], strides = [1, 1]} : vector<16x384xf32> to vector<16x128xf32>
    %50 = vector.extract_strided_slice %40 {offsets = [0, 384], sizes = [16, 128], strides = [1, 1]} : vector<16x512xf32> to vector<16x128xf32>
    %51 = math.tanh %50 : vector<16x128xf32>
    %52 = arith.mulf %48, %32 : vector<16x128xf32>
    %53 = arith.mulf %47, %51 : vector<16x128xf32>
    %54 = arith.addf %52, %53 : vector<16x128xf32>
    %55 = math.tanh %54 : vector<16x128xf32>
    %56 = arith.mulf %49, %55 : vector<16x128xf32>
    %c2_i32 = arith.constant 2 : i32
    %c16_i32_25 = arith.constant 16 : i32
    %57 = arith.muli %c2_i32, %c16_i32_25 : i32
    %58 = arith.index_cast %57 : i32 to index
    %c0_26 = arith.constant 0 : index
    %59 = vector.load %arg9[%58, %c0_26] : memref<128x1024xf32, #tpu.memory_space<vmem>>, vector<16x512xf32>
    %60 = arith.truncf %56 : vector<16x128xf32> to vector<16x128xbf16>
    %cst_27 = arith.constant dense<0.000000e+00> : vector<16x512xf32>
    %61 = tpu.matmul %60, %4, %cst_27 {dimension_numbers = #tpu.dot_dimension_numbers<[1], [0], [0], [1], [0, 0, 1, 1], [], []>} : vector<16x128xbf16>, vector<128x512xbf16>, vector<16x512xf32> -> vector<16x512xf32>
    %62 = arith.addf %59, %61 : vector<16x512xf32>
    %63 = vector.extract_strided_slice %62 {offsets = [0, 0], sizes = [16, 384], strides = [1, 1]} : vector<16x512xf32> to vector<16x384xf32>
    %64 = arith.negf %63 : vector<16x384xf32>
    %65 = math.exp %64 : vector<16x384xf32>
    %cst_28 = arith.constant 1.000000e+00 : f32
    %66 = vector.broadcast %cst_28 : f32 to vector<16x384xf32>
    %67 = arith.addf %66, %65 : vector<16x384xf32>
    %68 = arith.divf %66, %67 : vector<16x384xf32>
    %69 = vector.extract_strided_slice %68 {offsets = [0, 0], sizes = [16, 128], strides = [1, 1]} : vector<16x384xf32> to vector<16x128xf32>
    %70 = vector.extract_strided_slice %68 {offsets = [0, 128], sizes = [16, 128], strides = [1, 1]} : vector<16x384xf32> to vector<16x128xf32>
    %71 = vector.extract_strided_slice %68 {offsets = [0, 256], sizes = [16, 128], strides = [1, 1]} : vector<16x384xf32> to vector<16x128xf32>
    %72 = vector.extract_strided_slice %62 {offsets = [0, 384], sizes = [16, 128], strides = [1, 1]} : vector<16x512xf32> to vector<16x128xf32>
    %73 = math.tanh %72 : vector<16x128xf32>
    %74 = arith.mulf %70, %54 : vector<16x128xf32>
    %75 = arith.mulf %69, %73 : vector<16x128xf32>
    %76 = arith.addf %74, %75 : vector<16x128xf32>
    %77 = math.tanh %76 : vector<16x128xf32>
    %78 = arith.mulf %71, %77 : vector<16x128xf32>
    %c3_i32 = arith.constant 3 : i32
    %c16_i32_29 = arith.constant 16 : i32
    %79 = arith.muli %c3_i32, %c16_i32_29 : i32
    %80 = arith.index_cast %79 : i32 to index
    %c0_30 = arith.constant 0 : index
    %81 = vector.load %arg9[%80, %c0_30] : memref<128x1024xf32, #tpu.memory_space<vmem>>, vector<16x512xf32>
    %82 = arith.truncf %78 : vector<16x128xf32> to vector<16x128xbf16>
    %cst_31 = arith.constant dense<0.000000e+00> : vector<16x512xf32>
    %83 = tpu.matmul %82, %4, %cst_31 {dimension_numbers = #tpu.dot_dimension_numbers<[1], [0], [0], [1], [0, 0, 1, 1], [], []>} : vector<16x128xbf16>, vector<128x512xbf16>, vector<16x512xf32> -> vector<16x512xf32>
    %84 = arith.addf %81, %83 : vector<16x512xf32>
    %85 = vector.extract_strided_slice %84 {offsets = [0, 0], sizes = [16, 384], strides = [1, 1]} : vector<16x512xf32> to vector<16x384xf32>
    %86 = arith.negf %85 : vector<16x384xf32>
    %87 = math.exp %86 : vector<16x384xf32>
    %cst_32 = arith.constant 1.000000e+00 : f32
    %88 = vector.broadcast %cst_32 : f32 to vector<16x384xf32>
    %89 = arith.addf %88, %87 : vector<16x384xf32>
    %90 = arith.divf %88, %89 : vector<16x384xf32>
    %91 = vector.extract_strided_slice %90 {offsets = [0, 0], sizes = [16, 128], strides = [1, 1]} : vector<16x384xf32> to vector<16x128xf32>
    %92 = vector.extract_strided_slice %90 {offsets = [0, 128], sizes = [16, 128], strides = [1, 1]} : vector<16x384xf32> to vector<16x128xf32>
    %93 = vector.extract_strided_slice %90 {offsets = [0, 256], sizes = [16, 128], strides = [1, 1]} : vector<16x384xf32> to vector<16x128xf32>
    %94 = vector.extract_strided_slice %84 {offsets = [0, 384], sizes = [16, 128], strides = [1, 1]} : vector<16x512xf32> to vector<16x128xf32>
    %95 = math.tanh %94 : vector<16x128xf32>
    %96 = arith.mulf %92, %76 : vector<16x128xf32>
    %97 = arith.mulf %91, %95 : vector<16x128xf32>
    %98 = arith.addf %96, %97 : vector<16x128xf32>
    %99 = math.tanh %98 : vector<16x128xf32>
    %100 = arith.mulf %93, %99 : vector<16x128xf32>
    %c4_i32 = arith.constant 4 : i32
    %c16_i32_33 = arith.constant 16 : i32
    %101 = arith.muli %c4_i32, %c16_i32_33 : i32
    %102 = arith.index_cast %101 : i32 to index
    %c0_34 = arith.constant 0 : index
    %103 = vector.load %arg9[%102, %c0_34] : memref<128x1024xf32, #tpu.memory_space<vmem>>, vector<16x512xf32>
    %104 = arith.truncf %100 : vector<16x128xf32> to vector<16x128xbf16>
    %cst_35 = arith.constant dense<0.000000e+00> : vector<16x512xf32>
    %105 = tpu.matmul %104, %4, %cst_35 {dimension_numbers = #tpu.dot_dimension_numbers<[1], [0], [0], [1], [0, 0, 1, 1], [], []>} : vector<16x128xbf16>, vector<128x512xbf16>, vector<16x512xf32> -> vector<16x512xf32>
    %106 = arith.addf %103, %105 : vector<16x512xf32>
    %107 = vector.extract_strided_slice %106 {offsets = [0, 0], sizes = [16, 384], strides = [1, 1]} : vector<16x512xf32> to vector<16x384xf32>
    %108 = arith.negf %107 : vector<16x384xf32>
    %109 = math.exp %108 : vector<16x384xf32>
    %cst_36 = arith.constant 1.000000e+00 : f32
    %110 = vector.broadcast %cst_36 : f32 to vector<16x384xf32>
    %111 = arith.addf %110, %109 : vector<16x384xf32>
    %112 = arith.divf %110, %111 : vector<16x384xf32>
    %113 = vector.extract_strided_slice %112 {offsets = [0, 0], sizes = [16, 128], strides = [1, 1]} : vector<16x384xf32> to vector<16x128xf32>
    %114 = vector.extract_strided_slice %112 {offsets = [0, 128], sizes = [16, 128], strides = [1, 1]} : vector<16x384xf32> to vector<16x128xf32>
    %115 = vector.extract_strided_slice %112 {offsets = [0, 256], sizes = [16, 128], strides = [1, 1]} : vector<16x384xf32> to vector<16x128xf32>
    %116 = vector.extract_strided_slice %106 {offsets = [0, 384], sizes = [16, 128], strides = [1, 1]} : vector<16x512xf32> to vector<16x128xf32>
    %117 = math.tanh %116 : vector<16x128xf32>
    %118 = arith.mulf %114, %98 : vector<16x128xf32>
    %119 = arith.mulf %113, %117 : vector<16x128xf32>
    %120 = arith.addf %118, %119 : vector<16x128xf32>
    %121 = math.tanh %120 : vector<16x128xf32>
    %122 = arith.mulf %115, %121 : vector<16x128xf32>
    %c5_i32 = arith.constant 5 : i32
    %c16_i32_37 = arith.constant 16 : i32
    %123 = arith.muli %c5_i32, %c16_i32_37 : i32
    %124 = arith.index_cast %123 : i32 to index
    %c0_38 = arith.constant 0 : index
    %125 = vector.load %arg9[%124, %c0_38] : memref<128x1024xf32, #tpu.memory_space<vmem>>, vector<16x512xf32>
    %126 = arith.truncf %122 : vector<16x128xf32> to vector<16x128xbf16>
    %cst_39 = arith.constant dense<0.000000e+00> : vector<16x512xf32>
    %127 = tpu.matmul %126, %4, %cst_39 {dimension_numbers = #tpu.dot_dimension_numbers<[1], [0], [0], [1], [0, 0, 1, 1], [], []>} : vector<16x128xbf16>, vector<128x512xbf16>, vector<16x512xf32> -> vector<16x512xf32>
    %128 = arith.addf %125, %127 : vector<16x512xf32>
    %129 = vector.extract_strided_slice %128 {offsets = [0, 0], sizes = [16, 384], strides = [1, 1]} : vector<16x512xf32> to vector<16x384xf32>
    %130 = arith.negf %129 : vector<16x384xf32>
    %131 = math.exp %130 : vector<16x384xf32>
    %cst_40 = arith.constant 1.000000e+00 : f32
    %132 = vector.broadcast %cst_40 : f32 to vector<16x384xf32>
    %133 = arith.addf %132, %131 : vector<16x384xf32>
    %134 = arith.divf %132, %133 : vector<16x384xf32>
    %135 = vector.extract_strided_slice %134 {offsets = [0, 0], sizes = [16, 128], strides = [1, 1]} : vector<16x384xf32> to vector<16x128xf32>
    %136 = vector.extract_strided_slice %134 {offsets = [0, 128], sizes = [16, 128], strides = [1, 1]} : vector<16x384xf32> to vector<16x128xf32>
    %137 = vector.extract_strided_slice %134 {offsets = [0, 256], sizes = [16, 128], strides = [1, 1]} : vector<16x384xf32> to vector<16x128xf32>
    %138 = vector.extract_strided_slice %128 {offsets = [0, 384], sizes = [16, 128], strides = [1, 1]} : vector<16x512xf32> to vector<16x128xf32>
    %139 = math.tanh %138 : vector<16x128xf32>
    %140 = arith.mulf %136, %120 : vector<16x128xf32>
    %141 = arith.mulf %135, %139 : vector<16x128xf32>
    %142 = arith.addf %140, %141 : vector<16x128xf32>
    %143 = math.tanh %142 : vector<16x128xf32>
    %144 = arith.mulf %137, %143 : vector<16x128xf32>
    %c6_i32 = arith.constant 6 : i32
    %c16_i32_41 = arith.constant 16 : i32
    %145 = arith.muli %c6_i32, %c16_i32_41 : i32
    %146 = arith.index_cast %145 : i32 to index
    %c0_42 = arith.constant 0 : index
    %147 = vector.load %arg9[%146, %c0_42] : memref<128x1024xf32, #tpu.memory_space<vmem>>, vector<16x512xf32>
    %148 = arith.truncf %144 : vector<16x128xf32> to vector<16x128xbf16>
    %cst_43 = arith.constant dense<0.000000e+00> : vector<16x512xf32>
    %149 = tpu.matmul %148, %4, %cst_43 {dimension_numbers = #tpu.dot_dimension_numbers<[1], [0], [0], [1], [0, 0, 1, 1], [], []>} : vector<16x128xbf16>, vector<128x512xbf16>, vector<16x512xf32> -> vector<16x512xf32>
    %150 = arith.addf %147, %149 : vector<16x512xf32>
    %151 = vector.extract_strided_slice %150 {offsets = [0, 0], sizes = [16, 384], strides = [1, 1]} : vector<16x512xf32> to vector<16x384xf32>
    %152 = arith.negf %151 : vector<16x384xf32>
    %153 = math.exp %152 : vector<16x384xf32>
    %cst_44 = arith.constant 1.000000e+00 : f32
    %154 = vector.broadcast %cst_44 : f32 to vector<16x384xf32>
    %155 = arith.addf %154, %153 : vector<16x384xf32>
    %156 = arith.divf %154, %155 : vector<16x384xf32>
    %157 = vector.extract_strided_slice %156 {offsets = [0, 0], sizes = [16, 128], strides = [1, 1]} : vector<16x384xf32> to vector<16x128xf32>
    %158 = vector.extract_strided_slice %156 {offsets = [0, 128], sizes = [16, 128], strides = [1, 1]} : vector<16x384xf32> to vector<16x128xf32>
    %159 = vector.extract_strided_slice %156 {offsets = [0, 256], sizes = [16, 128], strides = [1, 1]} : vector<16x384xf32> to vector<16x128xf32>
    %160 = vector.extract_strided_slice %150 {offsets = [0, 384], sizes = [16, 128], strides = [1, 1]} : vector<16x512xf32> to vector<16x128xf32>
    %161 = math.tanh %160 : vector<16x128xf32>
    %162 = arith.mulf %158, %142 : vector<16x128xf32>
    %163 = arith.mulf %157, %161 : vector<16x128xf32>
    %164 = arith.addf %162, %163 : vector<16x128xf32>
    %165 = math.tanh %164 : vector<16x128xf32>
    %166 = arith.mulf %159, %165 : vector<16x128xf32>
    %c7_i32 = arith.constant 7 : i32
    %c16_i32_45 = arith.constant 16 : i32
    %167 = arith.muli %c7_i32, %c16_i32_45 : i32
    %168 = arith.index_cast %167 : i32 to index
    %c0_46 = arith.constant 0 : index
    %169 = vector.load %arg9[%168, %c0_46] : memref<128x1024xf32, #tpu.memory_space<vmem>>, vector<16x512xf32>
    %170 = arith.truncf %166 : vector<16x128xf32> to vector<16x128xbf16>
    %cst_47 = arith.constant dense<0.000000e+00> : vector<16x512xf32>
    %171 = tpu.matmul %170, %4, %cst_47 {dimension_numbers = #tpu.dot_dimension_numbers<[1], [0], [0], [1], [0, 0, 1, 1], [], []>} : vector<16x128xbf16>, vector<128x512xbf16>, vector<16x512xf32> -> vector<16x512xf32>
    %172 = arith.addf %169, %171 : vector<16x512xf32>
    %173 = vector.extract_strided_slice %172 {offsets = [0, 0], sizes = [16, 384], strides = [1, 1]} : vector<16x512xf32> to vector<16x384xf32>
    %174 = arith.negf %173 : vector<16x384xf32>
    %175 = math.exp %174 : vector<16x384xf32>
    %cst_48 = arith.constant 1.000000e+00 : f32
    %176 = vector.broadcast %cst_48 : f32 to vector<16x384xf32>
    %177 = arith.addf %176, %175 : vector<16x384xf32>
    %178 = arith.divf %176, %177 : vector<16x384xf32>
    %179 = vector.extract_strided_slice %178 {offsets = [0, 0], sizes = [16, 128], strides = [1, 1]} : vector<16x384xf32> to vector<16x128xf32>
    %180 = vector.extract_strided_slice %178 {offsets = [0, 128], sizes = [16, 128], strides = [1, 1]} : vector<16x384xf32> to vector<16x128xf32>
    %181 = vector.extract_strided_slice %178 {offsets = [0, 256], sizes = [16, 128], strides = [1, 1]} : vector<16x384xf32> to vector<16x128xf32>
    %182 = vector.extract_strided_slice %172 {offsets = [0, 384], sizes = [16, 128], strides = [1, 1]} : vector<16x512xf32> to vector<16x128xf32>
    %183 = math.tanh %182 : vector<16x128xf32>
    %184 = arith.mulf %180, %164 : vector<16x128xf32>
    %185 = arith.mulf %179, %183 : vector<16x128xf32>
    %186 = arith.addf %184, %185 : vector<16x128xf32>
    %187 = math.tanh %186 : vector<16x128xf32>
    %188 = arith.mulf %181, %187 : vector<16x128xf32>
    %c8_i32 = arith.constant 8 : i32
    %c112 = arith.constant 112 : index
    %c512 = arith.constant 512 : index
    %189 = vector.load %arg9[%c112, %c512] : memref<128x1024xf32, #tpu.memory_space<vmem>>, vector<16x512xf32>
    %190 = vector.extract_strided_slice %189 {offsets = [0, 0], sizes = [16, 384], strides = [1, 1]} : vector<16x512xf32> to vector<16x384xf32>
    %191 = arith.negf %190 : vector<16x384xf32>
    %192 = math.exp %191 : vector<16x384xf32>
    %cst_49 = arith.constant 1.000000e+00 : f32
    %193 = vector.broadcast %cst_49 : f32 to vector<16x384xf32>
    %194 = arith.addf %193, %192 : vector<16x384xf32>
    %195 = arith.divf %193, %194 : vector<16x384xf32>
    %196 = vector.extract_strided_slice %195 {offsets = [0, 0], sizes = [16, 128], strides = [1, 1]} : vector<16x384xf32> to vector<16x128xf32>
    %197 = vector.extract_strided_slice %195 {offsets = [0, 128], sizes = [16, 128], strides = [1, 1]} : vector<16x384xf32> to vector<16x128xf32>
    %198 = vector.extract_strided_slice %195 {offsets = [0, 256], sizes = [16, 128], strides = [1, 1]} : vector<16x384xf32> to vector<16x128xf32>
    %199 = vector.extract_strided_slice %189 {offsets = [0, 384], sizes = [16, 128], strides = [1, 1]} : vector<16x512xf32> to vector<16x128xf32>
    %200 = math.tanh %199 : vector<16x128xf32>
    %201 = arith.mulf %197, %12 : vector<16x128xf32>
    %202 = arith.mulf %196, %200 : vector<16x128xf32>
    %203 = arith.addf %201, %202 : vector<16x128xf32>
    %204 = math.tanh %203 : vector<16x128xf32>
    %205 = arith.mulf %198, %204 : vector<16x128xf32>
    %206 = tpu.concatenate %188, %205 in 1 : vector<16x128xf32>, vector<16x128xf32> -> vector<16x256xf32>
    %207 = arith.truncf %206 : vector<16x256xf32> to vector<16x256xbf16>
    %c0_50 = arith.constant 0 : index
    %c0_51 = arith.constant 0 : index
    %208 = vector.load %arg5[%c0_50, %c0_51] : memref<256x128xbf16, #tpu.memory_space<vmem>>, vector<256x128xbf16>
    %cst_52 = arith.constant dense<0.000000e+00> : vector<16x128xf32>
    %209 = tpu.matmul %207, %208, %cst_52 {dimension_numbers = #tpu.dot_dimension_numbers<[1], [0], [0], [1], [0, 0, 1, 1], [], []>} : vector<16x256xbf16>, vector<256x128xbf16>, vector<16x128xf32> -> vector<16x128xf32>
    %c0_53 = arith.constant 0 : index
    %c0_54 = arith.constant 0 : index
    %210 = vector.load %arg6[%c0_53, %c0_54] : memref<1x128xf32, #tpu.memory_space<vmem>>, vector<1x128xf32>
    %211 = vector.broadcast %210 : vector<1x128xf32> to vector<16x128xf32>
    %212 = arith.addf %209, %211 : vector<16x128xf32>
    %c0_55 = arith.constant 0 : index
    %c0_56 = arith.constant 0 : index
    %213 = vector.load %arg7[%c0_55, %c0_56] : memref<16x128xf32, #tpu.memory_space<vmem>>, vector<16x128xf32>
    tpu.vector_store %arg7[%c0_55, %c0_56], %212 {strides = array<i32>} : memref<16x128xf32, #tpu.memory_space<vmem>>, vector<16x128xf32>,
    return
  }
}

</mosaic_0001>

<bundles_post_ra>
// kernel: tpu_custom_call.1
= control target key start
LH: loop header
LB: loop body
LE: loop exit
PB: predicated region body
PF: predicated region fallthrough
CT: control target
= control target key end

     0   :  { %12 = vsyncpa [#allocation8], 0  ;;  %s4487_s0 = inlined_call_operand.hbm [shape: s32[128], index: 0, kind: input, shape index: {}]   ;;  %s4488_s1 = inlined_call_operand.hbm [shape: f32[100,128], index: 1, kind: input, shape index: {}]   ;;  %s4489_s2 = inlined_call_operand.hbm [shape: bf16[128,1024], index: 2, kind: input, shape index: {}]   ;;  %s4490_s3 = inlined_call_operand.hbm [shape: bf16[128,512], index: 3, kind: input, shape index: {}]   ;;  %s4491_s4 = inlined_call_operand.vmem [shape: f32[1,1024], index: 4, kind: input, shape index: {}]   ;;  %s4492_s5 = inlined_call_operand.hbm [shape: bf16[256,128], index: 5, kind: input, shape index: {}]   ;;  %s4493_s6 = inlined_call_operand.vmem [shape: f32[1,128], index: 6, kind: input, shape index: {}]   ;;  %s4494_s7 = inlined_call_operand.hbm [shape: f32[16,128], index: 7, kind: output, shape index: {}]  }
   0x1   :  { %13 = vsyncpa [#allocation6], 0 }
   0x2   :  { %14 = vsyncpa [#allocation11], 0 }
   0x3   :  { %15 = vsyncpa [#allocation7], 0  ;;  %s3692_s24 = smov [#allocation10]   ;;  %s3544_s28 = scalar_lea.hbm %s4490_s3, 4096 }
   0x4   :  { %s41_s25 = sshll.u32 %s3692_s24, 4  ;;  %p3545_p0 = scmp.ne.s32.totalorder %s4490_s3, %s3544_s28  ;;  %s42_s25 = int_to_ptr.vmem [resolvable:$true] %s41_s25 }
   0x5   :  { %p3548_p1 = scmp.lt.u32.totalorder %s3544_s28, %s4490_s3 }
   0x7   :  { %p3550_p2 = pnand %p3548_p1, %p3545_p0 }
   0x9   :  { %3553 = shalt.err (!%p3550_p2)
}
   0xa   :  { %s3554_s10 = scalar_lea.vmem %s42_s25, 4096  ;;  %p3559_p4 = scmp.lt.s32.totalorder %s42_s25, %s42_s25 }
   0xb   :  { %p3555_p3 = scmp.ne.s32.totalorder %s42_s25, %s3554_s10  ;;  %p3560_p5 = scmp.lt.s32.totalorder %s3554_s10, %s3554_s10 }
   0xd   :  { %p3561_p6 = por %p3560_p5, %p3559_p4 }
   0xf   :  { %p3562_p7 = pnand %p3561_p6, %p3555_p3 }
  0x11   :  { %3565 = shalt.err (!%p3562_p7)
}
  0x12   :  { %s3693_s11 = smov 256   ;;  %s3694_s12 = smov 16  }
  0x13   :  { %47 = dma.hbm_to_vmem [thread:$0]  %s4490_s3, 4096, %s42_s25, [#allocation11], %s3693_s11, %s3693_s11, %s3694_s12  }
  0x14   :  { %s3566_s17 = scalar_lea.hbm %s4487_s0, 16 }
  0x15   :  { %p3567_p8 = scmp.ne.s32.totalorder %s4487_s0, %s3566_s17  ;;  %p3570_p9 = scmp.lt.u32.totalorder %s3566_s17, %s4487_s0 }
  0x17   :  { %p3572_p10 = pnand %p3570_p9, %p3567_p8 }
  0x19   :  { %3575 = shalt.err (!%p3572_p10)
}
  0x1a   :  { %s3695_s22 = smov [#allocation5]   ;;  %s3696_s3 = smov [#allocation9]  }
  0x1b   :  { %23 = dma.hbm_to_smem %s4487_s0, 16, %s3695_s22, [#allocation8]  }
  0x1c   :  { %s29_s25 = sshll.u32 %s3696_s3, 4  ;;  %s3576_s28 = scalar_lea.hbm %s4489_s2, 8192  ;;  %s30_s25 = int_to_ptr.vmem [resolvable:$true] %s29_s25 }
  0x1d   :  { %p3577_p11 = scmp.ne.s32.totalorder %s4489_s2, %s3576_s28  ;;  %p3580_p12 = scmp.lt.u32.totalorder %s3576_s28, %s4489_s2 }
  0x1f   :  { %p3582_p13 = pnand %p3580_p12, %p3577_p11 }
  0x21   :  { %3585 = shalt.err (!%p3582_p13)
}
  0x22   :  { %s3586_s10 = scalar_lea.vmem %s30_s25, 8192  ;;  %p3591_p1 = scmp.lt.s32.totalorder %s30_s25, %s30_s25 }
  0x23   :  { %p3587_p0 = scmp.ne.s32.totalorder %s30_s25, %s3586_s10  ;;  %p3592_p2 = scmp.lt.s32.totalorder %s3586_s10, %s3586_s10 }
  0x25   :  { %p3593_p3 = por %p3592_p2, %p3591_p1 }
  0x27   :  { %p3594_p4 = pnand %p3593_p3, %p3587_p0 }
  0x29   :  { %3597 = shalt.err (!%p3594_p4)
}
  0x2a   :  { %s3697_s0 = smov 512   ;;  %s3698_s11 = smov 32  }
  0x2b   :  { %35 = dma.hbm_to_vmem [thread:$0]  %s4489_s2, 8192, %s30_s25, [#allocation6], %s3697_s0, %s3697_s0, %s3698_s11  }
  0x2c   :  { %s3699_s14 = smov [#allocation12]   ;;  %s3598_s18 = scalar_lea.hbm %s4492_s5, 2048 }
  0x2d   :  { %s55_s15 = sshll.u32 %s3699_s14, 4  ;;  %p3599_p5 = scmp.ne.s32.totalorder %s4492_s5, %s3598_s18  ;;  %s56_s15 = int_to_ptr.vmem [resolvable:$true] %s55_s15 }
  0x2e   :  { %p3602_p6 = scmp.lt.u32.totalorder %s3598_s18, %s4492_s5 }
  0x30   :  { %p3604_p7 = pnand %p3602_p6, %p3599_p5 }
  0x32   :  { %3607 = shalt.err (!%p3604_p7)
}
  0x33   :  { %s3608_s23 = scalar_lea.vmem %s56_s15, 2048  ;;  %p3613_p9 = scmp.lt.s32.totalorder %s56_s15, %s56_s15 }
  0x34   :  { %p3609_p8 = scmp.ne.s32.totalorder %s56_s15, %s3608_s23  ;;  %p3614_p10 = scmp.lt.s32.totalorder %s3608_s23, %s3608_s23 }
  0x36   :  { %p3615_p11 = por %p3614_p10, %p3613_p9 }
  0x38   :  { %p3616_p12 = pnand %p3615_p11, %p3609_p8 }
  0x3a   :  { %3619 = shalt.err (!%p3616_p12)
}
  0x3b   :  { %s3700_s2 = smov 64   ;;  %s3701_s24 = smov 4  }
  0x3c   :  { %61 = dma.hbm_to_vmem [thread:$0]  %s4492_s5, 2048, %s56_s15, [#allocation11], %s3700_s2, %s3700_s2, %s3701_s24  }
  0x3d   :  { %3674 = dma.done.wait [#allocation8], 16  }
  0x3e   :  { %3675 = vsyncadd [#allocation8], 4294967280 }
  0x3f   :  { %3676 = dma.done.wait [#allocation6], 8192  }
  0x40   :  { %3677 = vsyncadd [#allocation6], 4294959104 }
  0x41   :  { %3678 = dma.done.wait [#allocation11], 6144  }
  0x42   :  { %3679 = vsyncadd [#allocation11], 4294961152 }
  0x43   :  { %76 = sfence }
  0x44   :  { %s3795_s26 = smov 0  }
  0x45 LB: > { %s84_s27 = sld [smem:[#allocation5 + %s3686_s26]]  ;;  %s87_s28 = scalar_lea.vmem [#allocation2], %s3686_s26  ;;  %s3686_s26 = sphi %s3795_s26, %s83_s26  }
  0x46   : > { %s95_s29 = sshll.u32 %s87_s28, 4  ;;  %s3622_s12 = scalar_lea.hbm %s4488_s1, 1664  ;;  %s96_s29 = int_to_ptr.vmem [resolvable:$true] %s95_s29 }
  0x4b   : > { %s2811_s5 = sshll.u32 %s84_s27, 4 }
  0x4c   : > { %s86_s9 = scalar_lea.hbm %s4488_s1, %s2811_s5 }
  0x4d   : > { %s3620_s10 = scalar_lea.hbm %s86_s9, 16  ;;  %p3623_p0 = scmp.lt.u32.totalorder %s86_s9, %s4488_s1 }
  0x4e   : > { %p3621_p13 = scmp.ne.s32.totalorder %s86_s9, %s3620_s10  ;;  %p3624_p1 = scmp.lt.u32.totalorder %s3622_s12, %s3620_s10 }
  0x4f   : > { %p3626_p3 = scmp.lt.u32.totalorder %s3620_s10, %s86_s9 }
  0x50   : > { %p3625_p2 = por %p3624_p1, %p3623_p0 }
  0x52   : > { %p3627_p4 = por %p3626_p3, %p3625_p2 }
  0x54   : > { %p3628_p5 = pnand %p3627_p4, %p3621_p13 }
  0x56   : > { %3631 = shalt.err (!%p3628_p5)  }
  0x57   : > { %s3632_s15 = scalar_lea.vmem %s96_s29, 16  ;;  %s3702_s16 = smov [#allocation2]  }
  0x58   : > { %p3633_p6 = scmp.ne.s32.totalorder %s96_s29, %s3632_s15  ;;  %s3634_s17 = sshll.u32 %s3702_s16, 4  ;;  %s3635_s17 = int_to_ptr.vmem [resolvable:$false] %s3634_s17 }
  0x59   : > { %s3636_s18 = scalar_lea.vmem %s3635_s17, 2048  ;;  %p3637_p7 = scmp.lt.s32.totalorder %s96_s29, %s3635_s17 }
  0x5a   : > { %p3638_p8 = scmp.lt.s32.totalorder %s3636_s18, %s3632_s15 }
  0x5c   : > { %p3639_p9 = por %p3638_p8, %p3637_p7 }
  0x5e   : > { %p3640_p10 = pnand %p3639_p9, %p3633_p6 }
  0x60   : > { %3643 = shalt.err (!%p3640_p10)  }
  0x61   : > { %98 = dma.hbm_to_vmem [thread:$0]  %s86_s9, 16, %s96_s29, [#allocation4] }
  0x62   : > { %s83_s26 = sadd.s32 1, %s3686_s26  }
  0x63   : > { %p80_p11 = scmp.ge.s32.totalorder %s83_s26, 128  }
  0x64   :  { %s3688_s19 = smov (%p80_p11), 0  }
  0x65   :  { %82 = sbr.rel (!%p80_p11) target bundleno = 69 (0x45), region = 80 }
  0x6c LB: > { %3680 = dma.done.wait [#allocation4], 16  ;;  %s3690_s19 = sphi %s3688_s19, %s104_s19  }
  0x6d   : > { %3681 = vsyncadd [#allocation4], 4294967280  ;;  %s104_s19 = sadd.s32 1, %s3690_s19  }
  0x6e   : > { %p101_p12 = scmp.ge.s32.totalorder %s104_s19, 128  }
  0x6f   :  { %v164_v0 = vld [vmem:[#allocation9] sm:$0xff] (%p101_p12)  ;;  %v165_v2 = vld [vmem:[#allocation9 + $0x8] sm:$0xff] (%p101_p12)  ;;  %v3703_v8 = vmov (%p101_p12), 0   ;;  %s3704_s22 = smov (%p101_p12), [#allocation13]  }
  0x70   :  { %103 = sbr.rel (!%p101_p12) target bundleno = 108 (0x6c), region = 91  ;;  %v168_v1 = vld [vmem:[#allocation9 + $0x20] sm:$0xff] (%p101_p12)  ;;  %v169_v4 = vld [vmem:[#allocation9 + $0x28] sm:$0xff] (%p101_p12)  ;;  %622 = vmatprep.mubr.bf16.mxu0 (%p101_p12), %v3703_v8  ;;  %735 = vmatprep.mubr.bf16.mxu1 (%p101_p12), %v3703_v8  ;;  %s2778_s23 = sshll.u32 (%p101_p12), %s3704_s22, 4  ;;  %s2779_s23 = int_to_ptr.vmem [resolvable:$true] %s2778_s23 }
  0x71   :  { %v2813_v3 = vcombine.high (%p101_p12), %v164_v0, %v168_v1  ;;  %v2812_v5 = vcombine.low (%p101_p12), %v164_v0, %v168_v1  ;;  %v172_v6 = vld [vmem:[#allocation9 + $0x40] sm:$0xff] (%p101_p12)  ;;  %v2815_v9 = vcombine.high (%p101_p12), %v165_v2, %v169_v4  ;;  %v2814_v10 = vcombine.low (%p101_p12), %v165_v2, %v169_v4  ;;  %v173_v12 = vld [vmem:[#allocation9 + $0x48] sm:$0xff] (%p101_p12)  ;;  %v166_v0 = vld [vmem:[#allocation9 + $0x10] sm:$0xff] (%p101_p12)  ;;  %s3644_s2 = scalar_lea.vmem (%p101_p12), %s2779_s23, 256  ;;  %p3649_p0 = scmp.lt.s32.totalorder (%p101_p12), %s2779_s23, %s2779_s23 }
  0x72   :  { %v176_v7 = vld [vmem:[#allocation9 + $0x60] sm:$0xff] (%p101_p12)  ;;  %v177_v13 = vld [vmem:[#allocation9 + $0x68] sm:$0xff] (%p101_p12)  ;;  %v170_v1 = vld [vmem:[#allocation9 + $0x30] sm:$0xff] (%p101_p12)  ;;  %p3645_p13 = scmp.ne.s32.totalorder (%p101_p12), %s2779_s23, %s3644_s2  ;;  %p3650_p1 = scmp.lt.s32.totalorder (%p101_p12), %s3644_s2, %s3644_s2 }
  0x73   :  { %v2821_v11 = vcombine.high (%p101_p12), %v172_v6, %v176_v7  ;;  %v180_v14 = vld [vmem:[#allocation9 + $0x80] sm:$0xff] (%p101_p12)  ;;  %590 = vmatprep.subr.bf16.mxu0 (%p101_p12), %v2813_v3  ;;  %v2823_v15 = vcombine.high (%p101_p12), %v173_v12, %v177_v13  ;;  %v181_v17 = vld [vmem:[#allocation9 + $0x88] sm:$0xff] (%p101_p12)  ;;  %703 = vmatprep.subr.bf16.mxu1 (%p101_p12), %v2815_v9  ;;  %v2820_v19 = vcombine.low (%p101_p12), %v172_v6, %v176_v7  ;;  %v167_v2 = vld [vmem:[#allocation9 + $0x18] sm:$0xff] (%p101_p12) }
  0x74   :  { %v184_v16 = vld [vmem:[#allocation9 + $0xa0] sm:$0xff] (%p101_p12)  ;;  %v185_v18 = vld [vmem:[#allocation9 + $0xa8] sm:$0xff] (%p101_p12)  ;;  %591 = vmatpush1.bf16.msra.mxu0 (%p101_p12), %v2812_v5  ;;  %704 = vmatpush1.bf16.msra.mxu1 (%p101_p12), %v2814_v10  ;;  %v2822_v20 = vcombine.low (%p101_p12), %v173_v12, %v177_v13  ;;  %v171_v3 = vld [vmem:[#allocation9 + $0x38] sm:$0xff] (%p101_p12)  ;;  %v2817_v7 = vcombine.high (%p101_p12), %v166_v0, %v170_v1  ;;  %p3651_p2 = por (%p101_p12), %p3650_p1, %p3649_p0 }
  0x75   :  { %592 = vmatprep.subr.bf16.mxu0 (%p101_p12), %v2821_v11  ;;  %v2829_v21 = vcombine.high (%p101_p12), %v180_v14, %v184_v16  ;;  %705 = vmatprep.subr.bf16.mxu1 (%p101_p12), %v2823_v15  ;;  %v2831_v22 = vcombine.high (%p101_p12), %v181_v17, %v185_v18  ;;  %v188_v23 = vld [vmem:[#allocation9 + $0xc0] sm:$0xff] (%p101_p12)  ;;  %v189_v25 = vld [vmem:[#allocation9 + $0xc8] sm:$0xff] (%p101_p12)  ;;  %v2828_v27 = vcombine.low (%p101_p12), %v180_v14, %v184_v16  ;;  %v174_v11 = vld [vmem:[#allocation9 + $0x50] sm:$0xff] (%p101_p12) }
  0x76   :  { %v192_v24 = vld [vmem:[#allocation9 + $0xe0] sm:$0xff] (%p101_p12)  ;;  %v193_v26 = vld [vmem:[#allocation9 + $0xe8] sm:$0xff] (%p101_p12)  ;;  %v2830_v28 = vcombine.low (%p101_p12), %v181_v17, %v185_v18  ;;  %v2819_v9 = vcombine.high (%p101_p12), %v167_v2, %v171_v3  ;;  %v178_v12 = vld [vmem:[#allocation9 + $0x70] sm:$0xff] (%p101_p12)  ;;  %v2816_v14 = vcombine.low (%p101_p12), %v166_v0, %v170_v1  ;;  %v2818_v18 = vcombine.low (%p101_p12), %v167_v2, %v171_v3  ;;  %p3652_p3 = pnand (%p101_p12), %p3651_p2, %p3645_p13 }
  0x77   :  { %v2837_v29 = vcombine.high %v188_v23, %v192_v24  ;;  %v2839_v30 = vcombine.high %v189_v25, %v193_v26  ;;  %v196_v31 = vld [vmem:[#allocation9 + $0x100] sm:$0xff]  ;;  %v197_v33 = vld [vmem:[#allocation9 + $0x108] sm:$0xff]  ;;  %v2836_v35 = vcombine.low %v188_v23, %v192_v24  ;;  %v2838_v36 = vcombine.low %v189_v25, %v193_v26  ;;  %v175_v13 = vld [vmem:[#allocation9 + $0x58] sm:$0xff] }
  0x78   :  { %593 = vmatpush1.bf16.msra.mxu0 %v2820_v19  ;;  %706 = vmatpush1.bf16.msra.mxu1 %v2822_v20  ;;  %v200_v32 = vld [vmem:[#allocation9 + $0x120] sm:$0xff]  ;;  %v201_v34 = vld [vmem:[#allocation9 + $0x128] sm:$0xff]  ;;  %v179_v15 = vld [vmem:[#allocation9 + $0x78] sm:$0xff]  ;;  %v2825_v17 = vcombine.high %v174_v11, %v178_v12  ;;  %v2824_v23 = vcombine.low %v174_v11, %v178_v12 }
  0x79   :  { %594 = vmatprep.subr.bf16.mxu0 %v2829_v21  ;;  %707 = vmatprep.subr.bf16.mxu1 %v2831_v22  ;;  %v2845_v37 = vcombine.high %v196_v31, %v200_v32  ;;  %v2847_v38 = vcombine.high %v197_v33, %v201_v34  ;;  %v204_v39 = vld [vmem:[#allocation9 + $0x140] sm:$0xff]  ;;  %v205_v41 = vld [vmem:[#allocation9 + $0x148] sm:$0xff]  ;;  %v2844_v43 = vcombine.low %v196_v31, %v200_v32  ;;  %v110_v16 = vld [vmem:[#allocation2 + $0x10] sm:$0xff] }
  0x7a   :  { %v208_v40 = vld [vmem:[#allocation9 + $0x160] sm:$0xff]  ;;  %v209_v42 = vld [vmem:[#allocation9 + $0x168] sm:$0xff]  ;;  %v2846_v44 = vcombine.low %v197_v33, %v201_v34  ;;  %v182_v19 = vld [vmem:[#allocation9 + $0x90] sm:$0xff]  ;;  %v2827_v22 = vcombine.high %v175_v13, %v179_v15 }
  0x7b   :  { %v2853_v45 = vcombine.high %v204_v39, %v208_v40  ;;  %v2855_v46 = vcombine.high %v205_v41, %v209_v42  ;;  %v212_v47 = vld [vmem:[#allocation9 + $0x180] sm:$0xff]  ;;  %v213_v49 = vld [vmem:[#allocation9 + $0x188] sm:$0xff]  ;;  %v2852_v51 = vcombine.low %v204_v39, %v208_v40  ;;  %v2854_v52 = vcombine.low %v205_v41, %v209_v42  ;;  %v186_v20 = vld [vmem:[#allocation9 + $0xb0] sm:$0xff] }
  0x7c   :  { %595 = vmatpush1.bf16.msra.mxu0 %v2828_v27  ;;  %708 = vmatpush1.bf16.msra.mxu1 %v2830_v28  ;;  %v216_v48 = vld [vmem:[#allocation9 + $0x1a0] sm:$0xff]  ;;  %v217_v50 = vld [vmem:[#allocation9 + $0x1a8] sm:$0xff]  ;;  %v111_v21 = vld [vmem:[#allocation2 + $0x18] sm:$0xff]  ;;  %v2833_v26 = vcombine.high %v182_v19, %v186_v20  ;;  %v2826_v27 = vcombine.low %v175_v13, %v179_v15  ;;  %v2832_v34 = vcombine.low %v182_v19, %v186_v20 }
  0x7d   :  { %596 = vmatprep.subr.bf16.mxu0 %v2837_v29  ;;  %709 = vmatprep.subr.bf16.mxu1 %v2839_v30  ;;  %v2861_v53 = vcombine.high %v212_v47, %v216_v48  ;;  %v2863_v54 = vcombine.high %v213_v49, %v217_v50  ;;  %v220_v55 = vld [vmem:[#allocation9 + $0x1c0] sm:$0xff]  ;;  %v221_v57 = vld [vmem:[#allocation9 + $0x1c8] sm:$0xff]  ;;  %v2860_v59 = vcombine.low %v212_v47, %v216_v48  ;;  %v183_v24 = vld [vmem:[#allocation9 + $0x98] sm:$0xff] }
  0x7e   :  { %v224_v56 = vld [vmem:[#allocation9 + $0x1e0] sm:$0xff]  ;;  %v225_v58 = vld [vmem:[#allocation9 + $0x1e8] sm:$0xff]  ;;  %v2862_v60 = vcombine.low %v213_v49, %v217_v50  ;;  %v187_v25 = vld [vmem:[#allocation9 + $0xb8] sm:$0xff]  ;;  %v3822_v28 = vpack.c.bf16 %v111_v21, %v110_v16 }
  0x7f   :  { %v2869_v61 = vcombine.high %v220_v55, %v224_v56  ;;  %v2871_v62 = vcombine.high %v221_v57, %v225_v58  ;;  %v108_v63 = vld [vmem:[#allocation2] sm:$0xff]  ;;  %v2868_v4 = vcombine.low %v220_v55, %v224_v56  ;;  %v109_v5 = vld [vmem:[#allocation2 + $0x8] sm:$0xff]  ;;  %v2870_v6 = vcombine.low %v221_v57, %v225_v58  ;;  %v190_v29 = vld [vmem:[#allocation9 + $0xd0] sm:$0xff] }
  0x80   :  { %597 = vmatpush1.bf16.msra.mxu0 %v2836_v35  ;;  %710 = vmatpush1.bf16.msra.mxu1 %v2838_v36  ;;  %v3816_v10 = vpack.c.bf16 %v109_v5, %v108_v63  ;;  %v194_v30 = vld [vmem:[#allocation9 + $0xf0] sm:$0xff]  ;;  %v2835_v31 = vcombine.high %v183_v24, %v187_v25  ;;  %v191_v32 = vld [vmem:[#allocation9 + $0xd8] sm:$0xff]  ;;  %v112_v35 = vld [vmem:[#allocation2 + $0x20] sm:$0xff] }
  0x81   :  { %598 = vmatprep.subr.bf16.mxu0 %v2845_v37  ;;  %711 = vmatprep.subr.bf16.mxu1 %v2847_v38  ;;  %v195_v33 = vld [vmem:[#allocation9 + $0xf8] sm:$0xff]  ;;  %v113_v36 = vld [vmem:[#allocation2 + $0x28] sm:$0xff]  ;;  %v2841_v37 = vcombine.high %v190_v29, %v194_v30  ;;  %v2834_v38 = vcombine.low %v183_v24, %v187_v25  ;;  %v198_v39 = vld [vmem:[#allocation9 + $0x110] sm:$0xff] }
  0x82   :  { %v202_v40 = vld [vmem:[#allocation9 + $0x130] sm:$0xff]  ;;  %v2843_v41 = vcombine.high %v191_v32, %v195_v33  ;;  %v199_v42 = vld [vmem:[#allocation9 + $0x118] sm:$0xff]  ;;  %v3828_v49 = vpack.c.bf16 %v113_v36, %v112_v35  ;;  %v117_v15 = vld [vmem:[#allocation2 + $0x48] sm:$0xff] }
  0x83   :  { %v206_v47 = vld [vmem:[#allocation9 + $0x150] sm:$0xff]  ;;  %v115_v57 = vld [vmem:[#allocation2 + $0x38] sm:$0xff]  ;;  %v120_v24 = vld [vmem:[#allocation2 + $0x60] sm:$0xff] }
  0x84   :  { %599 = vmatpush1.bf16.msra.mxu0 %v2844_v43  ;;  %712 = vmatpush1.bf16.msra.mxu1 %v2846_v44  ;;  %v203_v43 = vld [vmem:[#allocation9 + $0x138] sm:$0xff]  ;;  %v2840_v44 = vcombine.low %v190_v29, %v194_v30  ;;  %v210_v48 = vld [vmem:[#allocation9 + $0x170] sm:$0xff]  ;;  %v121_v25 = vld [vmem:[#allocation2 + $0x68] sm:$0xff] }
  0x85   :  { %600 = vmatprep.subr.bf16.mxu0 %v2853_v45  ;;  %713 = vmatprep.subr.bf16.mxu1 %v2855_v46  ;;  %v2849_v45 = vcombine.high %v198_v39, %v202_v40  ;;  %v2842_v46 = vcombine.low %v191_v32, %v195_v33  ;;  %v2851_v50 = vcombine.high %v199_v42, %v203_v43  ;;  %v218_v55 = vld [vmem:[#allocation9 + $0x1b0] sm:$0xff]  ;;  %v227_v5 = vld [vmem:[#allocation9 + $0x1f8] sm:$0xff] }
  0x86   :  { %v114_v56 = vld [vmem:[#allocation2 + $0x30] sm:$0xff]  ;;  %v2857_v58 = vcombine.high %v206_v47, %v210_v48  ;;  %v2856_v63 = vcombine.low %v206_v47, %v210_v48  ;;  %v3844_v20 = vld [vmem:[#allocation10 + $0xc] ss:$16 sps:$4 sm:$0xff]   ;;  %v3874_v33 = vld [vmem:[#allocation10 + $0x8] ss:$16 sps:$4 sm:$0xff]  }
  0x87   :  { %v222_v0 = vld [vmem:[#allocation9 + $0x1d0] sm:$0xff]  ;;  %v123_v29 = vld [vmem:[#allocation2 + $0x78] sm:$0xff] }
  0x88   :  { %601 = vmatpush1.bf16.msra.mxu0 %v2852_v51  ;;  %714 = vmatpush1.bf16.msra.mxu1 %v2854_v52  ;;  %v207_v51 = vld [vmem:[#allocation9 + $0x158] sm:$0xff]  ;;  %v226_v1 = vld [vmem:[#allocation9 + $0x1f0] sm:$0xff] }
  0x89   :  { %602 = vmatprep.subr.bf16.mxu0 %v2861_v53  ;;  %715 = vmatprep.subr.bf16.mxu1 %v2863_v54  ;;  %v211_v52 = vld [vmem:[#allocation9 + $0x178] sm:$0xff]  ;;  %v2848_v53 = vcombine.low %v198_v39, %v202_v40  ;;  %v214_v54 = vld [vmem:[#allocation9 + $0x190] sm:$0xff]  ;;  %v2873_v11 = vcombine.high %v222_v0, %v226_v1  ;;  %v2872_v16 = vcombine.low %v222_v0, %v226_v1 }
  0x8a   :  { %v2865_v2 = vcombine.high %v214_v54, %v218_v55  ;;  %v2858_v3 = vcombine.low %v207_v51, %v211_v52  ;;  %v118_v21 = vld [vmem:[#allocation2 + $0x50] sm:$0xff]  ;;  %v3901_v40 = vld [vmem:[#allocation10 + $0x48] ss:$16 sps:$4 sm:$0xff]   ;;  %v3933_v48 = vld [vmem:[#allocation10 + $0xac] ss:$16 sps:$4 sm:$0xff]  }
  0x8b   :  { %v3872_v32 = vld [vmem:[#allocation10 + $0x24] ss:$16 sps:$4 sm:$0xff]   ;;  %v3881_v35 = vld [vmem:[#allocation10 + $0x20] ss:$16 sps:$4 sm:$0xff]   ;;  %v3929_v47 = vld [vmem:[#allocation10 + $0x88] ss:$16 sps:$4 sm:$0xff]  }
  0x8c   :  { %603 = vmatpush1.bf16.msra.mxu0 %v2860_v59  ;;  %716 = vmatpush1.bf16.msra.mxu1 %v2862_v60  ;;  %v2850_v59 = vcombine.low %v199_v42, %v203_v43  ;;  %v215_v60 = vld [vmem:[#allocation9 + $0x198] sm:$0xff]  ;;  %v3885_v36 = vld [vmem:[#allocation10 + $0x44] ss:$16 sps:$4 sm:$0xff]   ;;  %v3911_v42 = vld [vmem:[#allocation10 + $0x60] ss:$16 sps:$4 sm:$0xff]  }
  0x8d   :  { %604 = vmatprep.subr.bf16.mxu0 %v2869_v61  ;;  %717 = vmatprep.subr.bf16.mxu1 %v2871_v62  ;;  %v219_v61 = vld [vmem:[#allocation9 + $0x1b8] sm:$0xff]  ;;  %v2859_v62 = vcombine.high %v207_v51, %v211_v52  ;;  %v3898_v39 = vld [vmem:[#allocation10 + $0x64] ss:$16 sps:$4 sm:$0xff]  }
  0x8e   :  { %v2866_v12 = vcombine.low %v215_v60, %v219_v61  ;;  %v3914_v43 = vld [vmem:[#allocation10 + $0x84] ss:$16 sps:$4 sm:$0xff]   ;;  %v3945_v52 = vld [vmem:[#allocation10 + $0xa8] ss:$16 sps:$4 sm:$0xff]  }
  0x8f   :  { %v3942_v51 = vld [vmem:[#allocation10 + $0xc4] ss:$16 sps:$4 sm:$0xff]  }
  0x90   :  { %605 = vmatpush1.bf16.msra.mxu0 %v2868_v4  ;;  %718 = vmatpush1.bf16.msra.mxu1 %v2870_v6  ;;  %v223_v4 = vld [vmem:[#allocation9 + $0x1d8] sm:$0xff]  ;;  %v3834_v6 = vpack.c.bf16 %v115_v57, %v114_v56  ;;  %v3967_v57 = vld [vmem:[#allocation10 + $0xe0] ss:$16 sps:$4 sm:$0xff]  }
  0x91   :  { %816 = vmatprep.subr.bf16.mxu0 %v2817_v7  ;;  %929 = vmatprep.subr.bf16.mxu1 %v2819_v9  ;;  %v2867_v7 = vcombine.high %v215_v60, %v219_v61  ;;  %v2864_v9 = vcombine.low %v214_v54, %v218_v55  ;;  %v2875_v13 = vcombine.high %v223_v4, %v227_v5  ;;  %v3955_v54 = vld [vmem:[#allocation10 + $0xe4] ss:$16 sps:$4 sm:$0xff]   ;;  %v3957_v55 = vld [vmem:[#allocation10 + $0xc8] ss:$16 sps:$4 sm:$0xff]   ;;  %v3961_v56 = vld [vmem:[#allocation10 + $0xec] ss:$16 sps:$4 sm:$0xff]  }
  0x92   :  { %v4035_v61 = vld [vmem:[%s4491_s4] sm:$0xff] }
  0x93   :  { %623 = vmatmul.mubr.bf16.vlgmr.msra.gmra.mrb[0].mxu0 %v3816_v10  ;;  %736 = vmatmul.mubr.bf16.vlgmr.msra.gmra.mrb[0].mxu1 %v3816_v10 }
  0x94   :  { %817 = vmatpush1.bf16.msra.mxu0 %v2816_v14  ;;  %632 = vmatprep.mubr.bf16.mxu0 %v3703_v8  ;;  %v116_v14 = vld [vmem:[#allocation2 + $0x40] sm:$0xff] }
  0x95   :  { %745 = vmatprep.mubr.bf16.mxu1 %v3703_v8  ;;  %818 = vmatprep.subr.bf16.mxu0 %v2825_v17  ;;  %v2874_v17 = vcombine.low %v223_v4, %v227_v5  ;;  %v3842_v19 = vpack.c.bf16 %v117_v15, %v116_v14 }
  0x96   :  { %930 = vmatpush1.bf16.msra.mxu1 %v2818_v18  ;;  %v3840_v18 = vld [vmem:[#allocation10 + $0x4] ss:$16 sps:$4 sm:$0xff]  }
  0x97   :  { %931 = vmatprep.subr.bf16.mxu1 %v2827_v22  ;;  %v119_v22 = vld [vmem:[#allocation2 + $0x58] sm:$0xff] }
  0x98   :  { %819 = vmatpush1.bf16.msra.mxu0 %v2824_v23  ;;  %v3852_v23 = vpack.c.bf16 %v119_v22, %v118_v21 }
  0x99   :  { %820 = vmatprep.subr.bf16.mxu0 %v2833_v26  ;;  %v3858_v26 = vpack.c.bf16 %v121_v25, %v120_v24 }
  0x9a   :  { %932 = vmatpush1.bf16.msra.mxu1 %v2826_v27  ;;  %v122_v27 = vld [vmem:[#allocation2 + $0x70] sm:$0xff] }
  0x9b   :  { %633 = vmatmul.mubr.bf16.gmra.mrb[4].mxu0 %v3822_v28  ;;  %933 = vmatprep.subr.bf16.mxu1 %v2835_v31  ;;  %v3864_v30 = vpack.c.bf16 %v123_v29, %v122_v27  ;;  %v3870_v31 = vld [vmem:[#allocation10] ss:$16 sps:$4 sm:$0xff]  }
  0x9c   :  { %746 = vmatmul.mubr.bf16.gmra.mrb[4].mxu1 %v3822_v28  ;;  %642 = vmatprep.mubr.bf16.mxu0 %v3703_v8 }
  0x9d   :  { %755 = vmatprep.mubr.bf16.mxu1 %v3703_v8  ;;  %821 = vmatpush1.bf16.msra.mxu0 %v2832_v34  ;;  %v3877_v34 = vld [vmem:[#allocation10 + $0x2c] ss:$16 sps:$4 sm:$0xff]  }
  0x9e   :  { %822 = vmatprep.subr.bf16.mxu0 %v2841_v37  ;;  %934 = vmatpush1.bf16.msra.mxu1 %v2834_v38  ;;  %v3889_v37 = vld [vmem:[#allocation10 + $0x28] ss:$16 sps:$4 sm:$0xff]   ;;  %v3892_v38 = vld [vmem:[#allocation10 + $0x4c] ss:$16 sps:$4 sm:$0xff]  }
  0x9f   :  { %935 = vmatprep.subr.bf16.mxu1 %v2843_v41  ;;  %v3905_v41 = vld [vmem:[#allocation10 + $0x6c] ss:$16 sps:$4 sm:$0xff]  }
  0xa1   :  { %823 = vmatpush1.bf16.msra.mxu0 %v2840_v44  ;;  %v3917_v44 = vld [vmem:[#allocation10 + $0x68] ss:$16 sps:$4 sm:$0xff]  }
  0xa2   :  { %824 = vmatprep.subr.bf16.mxu0 %v2849_v45  ;;  %936 = vmatpush1.bf16.msra.mxu1 %v2842_v46  ;;  %v3920_v45 = vld [vmem:[#allocation10 + $0x8c] ss:$16 sps:$4 sm:$0xff]   ;;  %v3926_v46 = vld [vmem:[#allocation10 + $0xa4] ss:$16 sps:$4 sm:$0xff]  }
  0xa3   :  { %643 = vmatmul.mubr.bf16.gmra.mrb[8].mxu0 %v3828_v49  ;;  %937 = vmatprep.subr.bf16.mxu1 %v2851_v50  ;;  %v3939_v50 = vld [vmem:[#allocation10 + $0xa0] ss:$16 sps:$4 sm:$0xff]  }
  0xa4   :  { %756 = vmatmul.mubr.bf16.gmra.mrb[8].mxu1 %v3828_v49  ;;  %652 = vmatprep.mubr.bf16.mxu0 %v3703_v8 }
  0xa5   :  { %765 = vmatprep.mubr.bf16.mxu1 %v3703_v8  ;;  %825 = vmatpush1.bf16.msra.mxu0 %v2848_v53  ;;  %v3948_v53 = vld [vmem:[#allocation10 + $0xcc] ss:$16 sps:$4 sm:$0xff]  }
  0xa6   :  { %826 = vmatprep.subr.bf16.mxu0 %v2857_v58  ;;  %938 = vmatpush1.bf16.msra.mxu1 %v2850_v59  ;;  %v3971_v58 = vld [vmem:[#allocation10 + $0xe8] ss:$16 sps:$4 sm:$0xff]   ;;  %v230_v59 = vlaneseq }
  0xa7   :  { %939 = vmatprep.subr.bf16.mxu1 %v2859_v62 }
  0xa8   :  { %v4030_v60 = vshrl.u32 %v230_v59, 7 }
  0xa9   :  { %827 = vmatpush1.bf16.msra.mxu0 %v2856_v63 }
  0xaa   :  { %828 = vmatprep.subr.bf16.mxu0 %v2865_v2  ;;  %940 = vmatpush1.bf16.msra.mxu1 %v2858_v3  ;;  %v248_v62 = vsub.s32 4, %v4030_v60  ;;  %v252_v63 = vsub.s32 5, %v4030_v60  ;;  %v256_v2 = vsub.s32 6, %v4030_v60  ;;  %v260_v3 = vsub.s32 7, %v4030_v60 }
  0xab   :  { %653 = vmatmul.mubr.bf16.gmra.mrb[12].mxu0 %v3834_v6  ;;  %941 = vmatprep.subr.bf16.mxu1 %v2867_v7 }
  0xac   :  { %766 = vmatmul.mubr.bf16.gmra.mrb[12].mxu1 %v3834_v6  ;;  %662 = vmatprep.mubr.bf16.mxu0 %v3703_v8  ;;  %v4040_v0 = vrot.slane %v4035_v61, %v248_v62  ;;  %v4043_v1 = vrot.slane %v4035_v61, %v252_v63  ;;  %v4048_v4 = vrot.slane %v4035_v61, %v256_v2 }
  0xad   :  { %775 = vmatprep.mubr.bf16.mxu1 %v3703_v8  ;;  %829 = vmatpush1.bf16.msra.mxu0 %v2864_v9  ;;  %v4051_v5 = vrot.slane %v4035_v61, %v260_v3 }
  0xae   :  { %830 = vmatprep.subr.bf16.mxu0 %v2873_v11  ;;  %942 = vmatpush1.bf16.msra.mxu1 %v2866_v12 }
  0xaf   :  { %943 = vmatprep.subr.bf16.mxu1 %v2875_v13 }
  0xb1   :  { %831 = vmatpush1.bf16.msra.mxu0 %v2872_v16 }
  0xb2   :  { %944 = vmatpush1.bf16.msra.mxu1 %v2874_v17  ;;  %1338 = vmatprep.subr.bf16.mxu0 %v3840_v18 }
  0xb3   :  { %663 = vmatmul.mubr.bf16.gmra.mrb[16].mxu0 %v3842_v19  ;;  %1381 = vmatprep.subr.bf16.mxu1 %v3844_v20 }
  0xb4   :  { %776 = vmatmul.mubr.bf16.gmra.mrb[16].mxu1 %v3842_v19  ;;  %672 = vmatprep.mubr.bf16.mxu0 %v3703_v8 }
  0xb5   :  { %785 = vmatprep.mubr.bf16.mxu1 %v3703_v8 }
  0xbb   :  { %673 = vmatmul.mubr.bf16.gmra.mrb[20].mxu0 %v3852_v23 }
  0xbc   :  { %786 = vmatmul.mubr.bf16.gmra.mrb[20].mxu1 %v3852_v23  ;;  %682 = vmatprep.mubr.bf16.mxu0 %v3703_v8 }
  0xbd   :  { %795 = vmatprep.mubr.bf16.mxu1 %v3703_v8 }
  0xc3   :  { %683 = vmatmul.mubr.bf16.gmra.mrb[24].mxu0 %v3858_v26 }
  0xc4   :  { %796 = vmatmul.mubr.bf16.gmra.mrb[24].mxu1 %v3858_v26  ;;  %692 = vmatprep.mubr.bf16.mxu0 %v3703_v8 }
  0xc5   :  { %805 = vmatprep.mubr.bf16.mxu1 %v3703_v8 }
  0xcb   :  { %693 = vmatmul.mubr.bf16.gmra.mrb[28].mxu0 %v3864_v30 }
  0xcc   :  { %806 = vmatmul.mubr.bf16.gmra.mrb[28].mxu1 %v3864_v30  ;;  %848 = vmatprep.mubr.bf16.mxu0 %v3703_v8 }
  0xcd   :  { %961 = vmatprep.mubr.bf16.mxu1 %v3703_v8 }
  0xd3   :  { %849 = vmatmul.mubr.bf16.vlgmr.msra.gmra.mrb[32].mxu0 %v3816_v10 }
  0xd4   :  { %962 = vmatmul.mubr.bf16.vlgmr.msra.gmra.mrb[32].mxu1 %v3816_v10  ;;  %1339 = vmatpush1.bf16.msra.mxu0 %v3870_v31  ;;  %v3896_v10 = vld [vmem:[#allocation10 + $0x40] ss:$16 sps:$4 sm:$0xff]  }
  0xd5   :  { %858 = vmatprep.mubr.bf16.mxu0 %v3703_v8  ;;  %971 = vmatprep.mubr.bf16.mxu1 %v3703_v8 }
  0xd6   :  { %1340 = vmatprep.subr.bf16.mxu0 %v3872_v32  ;;  %1382 = vmatpush1.bf16.msra.mxu1 %v3874_v33 }
  0xd7   :  { %1383 = vmatprep.subr.bf16.mxu1 %v3877_v34 }
  0xd8   :  { %1341 = vmatpush1.bf16.msra.mxu0 %v3881_v35 }
  0xd9   :  { %1342 = vmatprep.subr.bf16.mxu0 %v3885_v36 }
  0xda   :  { %1384 = vmatpush1.bf16.msra.mxu1 %v3889_v37 }
  0xdb   :  { %859 = vmatmul.mubr.bf16.gmra.mrb[36].mxu0 %v3822_v28  ;;  %1385 = vmatprep.subr.bf16.mxu1 %v3892_v38 }
  0xdc   :  { %972 = vmatmul.mubr.bf16.gmra.mrb[36].mxu1 %v3822_v28  ;;  %868 = vmatprep.mubr.bf16.mxu0 %v3703_v8  ;;  %v3923_v28 = vld [vmem:[#allocation10 + $0x80] ss:$16 sps:$4 sm:$0xff]  }
  0xdd   :  { %981 = vmatprep.mubr.bf16.mxu1 %v3703_v8  ;;  %1343 = vmatpush1.bf16.msra.mxu0 %v3896_v10 }
  0xde   :  { %1344 = vmatprep.subr.bf16.mxu0 %v3898_v39  ;;  %1386 = vmatpush1.bf16.msra.mxu1 %v3901_v40 }
  0xdf   :  { %1387 = vmatprep.subr.bf16.mxu1 %v3905_v41 }
  0xe1   :  { %1345 = vmatpush1.bf16.msra.mxu0 %v3911_v42 }
  0xe2   :  { %1346 = vmatprep.subr.bf16.mxu0 %v3914_v43  ;;  %1388 = vmatpush1.bf16.msra.mxu1 %v3917_v44 }
  0xe3   :  { %869 = vmatmul.mubr.bf16.gmra.mrb[40].mxu0 %v3828_v49  ;;  %1389 = vmatprep.subr.bf16.mxu1 %v3920_v45 }
  0xe4   :  { %982 = vmatmul.mubr.bf16.gmra.mrb[40].mxu1 %v3828_v49  ;;  %878 = vmatprep.mubr.bf16.mxu0 %v3703_v8  ;;  %v3951_v49 = vld [vmem:[#allocation10 + $0xc0] ss:$16 sps:$4 sm:$0xff]  }
  0xe5   :  { %991 = vmatprep.mubr.bf16.mxu1 %v3703_v8  ;;  %1347 = vmatpush1.bf16.msra.mxu0 %v3923_v28 }
  0xe6   :  { %1348 = vmatprep.subr.bf16.mxu0 %v3926_v46  ;;  %1390 = vmatpush1.bf16.msra.mxu1 %v3929_v47 }
  0xe7   :  { %1391 = vmatprep.subr.bf16.mxu1 %v3933_v48 }
  0xe9   :  { %1349 = vmatpush1.bf16.msra.mxu0 %v3939_v50 }
  0xea   :  { %1350 = vmatprep.subr.bf16.mxu0 %v3942_v51  ;;  %1392 = vmatpush1.bf16.msra.mxu1 %v3945_v52 }
  0xeb   :  { %879 = vmatmul.mubr.bf16.gmra.mrb[44].mxu0 %v3834_v6  ;;  %1393 = vmatprep.subr.bf16.mxu1 %v3948_v53 }
  0xec   :  { %992 = vmatmul.mubr.bf16.gmra.mrb[44].mxu1 %v3834_v6  ;;  %888 = vmatprep.mubr.bf16.mxu0 %v3703_v8 }
  0xed   :  { %1001 = vmatprep.mubr.bf16.mxu1 %v3703_v8  ;;  %1351 = vmatpush1.bf16.msra.mxu0 %v3951_v49 }
  0xee   :  { %1352 = vmatprep.subr.bf16.mxu0 %v3955_v54  ;;  %1394 = vmatpush1.bf16.msra.mxu1 %v3957_v55 }
  0xef   :  { %1395 = vmatprep.subr.bf16.mxu1 %v3961_v56 }
  0xf1   :  { %1353 = vmatpush1.bf16.msra.mxu0 %v3967_v57 }
  0xf2   :  { %1396 = vmatpush1.bf16.msra.mxu1 %v3971_v58  ;;  %1489 = vmatprep.subr.bf16.mxu0 %v3840_v18 }
  0xf3   :  { %889 = vmatmul.mubr.bf16.gmra.mrb[48].mxu0 %v3842_v19  ;;  %1532 = vmatprep.subr.bf16.mxu1 %v3844_v20 }
  0xf4   :  { %1002 = vmatmul.mubr.bf16.gmra.mrb[48].mxu1 %v3842_v19  ;;  %898 = vmatprep.mubr.bf16.mxu0 %v3703_v8 }
  0xf5   :  { %1011 = vmatprep.mubr.bf16.mxu1 %v3703_v8 }
  0xfb   :  { %899 = vmatmul.mubr.bf16.gmra.mrb[52].mxu0 %v3852_v23 }
  0xfc   :  { %1012 = vmatmul.mubr.bf16.gmra.mrb[52].mxu1 %v3852_v23  ;;  %908 = vmatprep.mubr.bf16.mxu0 %v3703_v8 }
  0xfd   :  { %1021 = vmatprep.mubr.bf16.mxu1 %v3703_v8 }
 0x103   :  { %909 = vmatmul.mubr.bf16.gmra.mrb[56].mxu0 %v3858_v26 }
 0x104   :  { %1022 = vmatmul.mubr.bf16.gmra.mrb[56].mxu1 %v3858_v26  ;;  %918 = vmatprep.mubr.bf16.mxu0 %v3703_v8 }
 0x105   :  { %1031 = vmatprep.mubr.bf16.mxu1 %v3703_v8 }
 0x10b   :  { %919 = vmatmul.mubr.bf16.gmra.mrb[60].mxu0 %v3864_v30 }
 0x10c   :  { %1032 = vmatmul.mubr.bf16.gmra.mrb[60].mxu1 %v3864_v30  ;;  %1370 = vmatprep.mubr.bf16.mxu0 %v3703_v8 }
 0x10d   :  { %1413 = vmatprep.mubr.bf16.mxu1 %v3703_v8 }
 0x113   :  { %1371 = vmatmul.mubr.bf16.vlgmr.msra.gmra.mrb[0].mxu0 %v3703_v8 }
 0x114   :  { %1414 = vmatmul.mubr.bf16.vlgmr.msra.gmra.mrb[0].mxu1 %v3703_v8  ;;  %1490 = vmatpush1.bf16.msra.mxu0 %v3870_v31 }
 0x115   :  { %1533 = vmatpush1.bf16.msra.mxu1 %v3874_v33  ;;  %1491 = vmatprep.subr.bf16.mxu0 %v3872_v32 }
 0x116   :  { %1534 = vmatprep.subr.bf16.mxu1 %v3877_v34  ;;  %1521 = vmatprep.mubr.bf16.mxu0 %v3703_v8 }
 0x117   :  { %1564 = vmatprep.mubr.bf16.mxu1 %v3703_v8 }
 0x118   :  { %1492 = vmatpush1.bf16.msra.mxu0 %v3881_v35 }
 0x119   :  { %1535 = vmatpush1.bf16.msra.mxu1 %v3889_v37  ;;  %1493 = vmatprep.subr.bf16.mxu0 %v3885_v36 }
 0x11a   :  { %1536 = vmatprep.subr.bf16.mxu1 %v3892_v38 }
 0x11c   :  { %1494 = vmatpush1.bf16.msra.mxu0 %v3896_v10 }
 0x11d   :  { %1537 = vmatpush1.bf16.msra.mxu1 %v3901_v40  ;;  %1495 = vmatprep.subr.bf16.mxu0 %v3898_v39 }
 0x11e   :  { %1538 = vmatprep.subr.bf16.mxu1 %v3905_v41 }
 0x120   :  { %1496 = vmatpush1.bf16.msra.mxu0 %v3911_v42 }
 0x121   :  { %1539 = vmatpush1.bf16.msra.mxu1 %v3917_v44  ;;  %1497 = vmatprep.subr.bf16.mxu0 %v3914_v43 }
 0x122   :  { %1540 = vmatprep.subr.bf16.mxu1 %v3920_v45 }
 0x124   :  { %1498 = vmatpush1.bf16.msra.mxu0 %v3923_v28 }
 0x125   :  { %1541 = vmatpush1.bf16.msra.mxu1 %v3929_v47  ;;  %1499 = vmatprep.subr.bf16.mxu0 %v3926_v46 }
 0x126   :  { %1542 = vmatprep.subr.bf16.mxu1 %v3933_v48 }
 0x128   :  { %1500 = vmatpush1.bf16.msra.mxu0 %v3939_v50 }
 0x129   :  { %1543 = vmatpush1.bf16.msra.mxu1 %v3945_v52  ;;  %1501 = vmatprep.subr.bf16.mxu0 %v3942_v51 }
 0x12a   :  { %1544 = vmatprep.subr.bf16.mxu1 %v3948_v53 }
 0x12c   :  { %1502 = vmatpush1.bf16.msra.mxu0 %v3951_v49 }
 0x12d   :  { %1545 = vmatpush1.bf16.msra.mxu1 %v3957_v55  ;;  %1503 = vmatprep.subr.bf16.mxu0 %v3955_v54 }
 0x12e   :  { %1546 = vmatprep.subr.bf16.mxu1 %v3961_v56 }
 0x130   :  { %1504 = vmatpush1.bf16.msra.mxu0 %v3967_v57 }
 0x131   :  { %1547 = vmatpush1.bf16.msra.mxu1 %v3971_v58  ;;  %1640 = vmatprep.subr.bf16.mxu0 %v3840_v18 }
 0x132   :  { %1683 = vmatprep.subr.bf16.mxu1 %v3844_v20 }
 0x1a6   :  { %v850_v6 = vpop.f32.mrb[32].mxu0 }
 0x1a7   :  { %v852_v7 = vpop.f32.mrb[33].mxu0  ;;  %v963_v9 = vpop.f32.mrb[32].mxu1 }
 0x1a8   :  { %v854_v11 = vpop.f32.mrb[34].mxu0  ;;  %v965_v12 = vpop.f32.mrb[33].mxu1 }
 0x1a9   :  { %v856_v13 = vpop.f32.mrb[35].mxu0  ;;  %v967_v14 = vpop.f32.mrb[34].mxu1 }
 0x1aa   :  { %v969_v15 = vpop.f32.mrb[35].mxu1 }
 0x1ae   :  { %v860_v16 = vpop.f32.mrb[36].mxu0 }
 0x1af   :  { %v862_v17 = vpop.f32.mrb[37].mxu0  ;;  %v973_v19 = vpop.f32.mrb[36].mxu1 }
 0x1b0   :  { %v864_v21 = vpop.f32.mrb[38].mxu0  ;;  %v975_v22 = vpop.f32.mrb[37].mxu1 }
 0x1b1   :  { %v866_v23 = vpop.f32.mrb[39].mxu0  ;;  %v977_v24 = vpop.f32.mrb[38].mxu1 }
 0x1b2   :  { %v979_v25 = vpop.f32.mrb[39].mxu1 }
 0x1b6   :  { %v870_v26 = vpop.f32.mrb[40].mxu0 }
 0x1b7   :  { %v872_v27 = vpop.f32.mrb[41].mxu0  ;;  %v983_v29 = vpop.f32.mrb[40].mxu1 }
 0x1b8   :  { %v874_v30 = vpop.f32.mrb[42].mxu0  ;;  %v985_v59 = vpop.f32.mrb[41].mxu1 }
 0x1b9   :  { %v876_v62 = vpop.f32.mrb[43].mxu0  ;;  %v987_v63 = vpop.f32.mrb[42].mxu1 }
 0x1ba   :  { %v989_v2 = vpop.f32.mrb[43].mxu1 }
 0x1be   :  { %v880_v3 = vpop.f32.mrb[44].mxu0 }
 0x1bf   :  { %v882_v6 = vpop.f32.mrb[45].mxu0  ;;  %v993_v7 = vpop.f32.mrb[44].mxu1 }
 0x1c0   :  { %v884_v9 = vpop.f32.mrb[46].mxu0  ;;  %v995_v11 = vpop.f32.mrb[45].mxu1 }
 0x1c1   :  { %v886_v12 = vpop.f32.mrb[47].mxu0  ;;  %v997_v13 = vpop.f32.mrb[46].mxu1 }
 0x1c2   :  { %v999_v14 = vpop.f32.mrb[47].mxu1 }
 0x1c6   :  { %v890_v15 = vpop.f32.mrb[48].mxu0 }
 0x1c7   :  { %v892_v16 = vpop.f32.mrb[49].mxu0  ;;  %v1003_v17 = vpop.f32.mrb[48].mxu1  ;;  %v232_v15 = vsub.s32 0, %v4030_v60 }
 0x1c8   :  { %v894_v19 = vpop.f32.mrb[50].mxu0  ;;  %v1005_v21 = vpop.f32.mrb[49].mxu1 }
 0x1c9   :  { %v896_v22 = vpop.f32.mrb[51].mxu0  ;;  %v1007_v23 = vpop.f32.mrb[50].mxu1  ;;  %v236_v21 = vsub.s32 1, %v4030_v60 }
 0x1ca   :  { %v1009_v24 = vpop.f32.mrb[51].mxu1 }
 0x1ce   :  { %v900_v25 = vpop.f32.mrb[52].mxu0 }
 0x1cf   :  { %v902_v26 = vpop.f32.mrb[53].mxu0  ;;  %v1013_v27 = vpop.f32.mrb[52].mxu1 }
 0x1d0   :  { %v904_v29 = vpop.f32.mrb[54].mxu0  ;;  %v1015_v30 = vpop.f32.mrb[53].mxu1 }
 0x1d1   :  { %v906_v59 = vpop.f32.mrb[55].mxu0  ;;  %v1017_v62 = vpop.f32.mrb[54].mxu1 }
 0x1d2   :  { %v1019_v63 = vpop.f32.mrb[55].mxu1 }
 0x1d6   :  { %v910_v2 = vpop.f32.mrb[56].mxu0 }
 0x1d7   :  { %v912_v3 = vpop.f32.mrb[57].mxu0  ;;  %v1023_v6 = vpop.f32.mrb[56].mxu1 }
 0x1d8   :  { %v914_v7 = vpop.f32.mrb[58].mxu0  ;;  %v1025_v9 = vpop.f32.mrb[57].mxu1  ;;  %v4063_v6 = vrot.slane %v4035_v61, %v232_v15 }
 0x1d9   :  { %v916_v11 = vpop.f32.mrb[59].mxu0  ;;  %v1027_v12 = vpop.f32.mrb[58].mxu1 }
 0x1da   :  { %v1029_v13 = vpop.f32.mrb[59].mxu1  ;;  %v4067_v11 = vrot.slane %v4035_v61, %v236_v21 }
 0x1de   :  { %v920_v14 = vpop.f32.mrb[60].mxu0 }
 0x1df   :  { %v921_v16 = vadd.f32 %v920_v14, %v4040_v0  ;;  %v922_v17 = vpop.f32.mrb[61].mxu0  ;;  %v1033_v19 = vpop.f32.mrb[60].mxu1 }
 0x1e0   :  { %v923_v22 = vadd.f32 %v922_v17, %v4043_v1  ;;  %v924_v23 = vpop.f32.mrb[62].mxu0  ;;  %v1034_v24 = vadd.f32 %v1033_v19, %v4048_v4  ;;  %v1035_v25 = vpop.f32.mrb[61].mxu1 }
 0x1e1   :  { %v2956_v26 = vmul.f32 -1.442695, %v921_v16  ;;  %v925_v27 = vadd.f32 %v924_v23, %v4040_v0  ;;  %v926_v29 = vpop.f32.mrb[63].mxu0  ;;  %v1036_v30 = vadd.f32 %v1035_v25, %v4051_v5  ;;  %v1037_v59 = vpop.f32.mrb[62].mxu1  ;;  %v244_v25 = vsub.s32 3, %v4030_v60 }
 0x1e2   :  { %v2957_v62 = vmul.f32 -1.442695, %v923_v22  ;;  %v927_v63 = vadd.f32 %v926_v29, %v4043_v1  ;;  %v1038_v2 = vadd.f32 %v1037_v59, %v4048_v4  ;;  %v1039_v3 = vpop.f32.mrb[63].mxu1  ;;  %v2958_v12 = vmul.f32 -1.442695, %v1034_v24 }
 0x1e3   :  { %3224 = vpow2.f32 %v2956_v26  ;;  %v2959_v7 = vmul.f32 -1.442695, %v925_v27  ;;  %v1040_v9 = vadd.f32 %v1039_v3, %v4051_v5  ;;  %v240_v59 = vsub.s32 2, %v4030_v60 }
 0x1e4   :  { %3226 = vpow2.f32 %v2957_v62  ;;  %v2960_v0 = vmul.f32 -1.442695, %v927_v63  ;;  %v2961_v16 = vmul.f32 -1.442695, %v1038_v2  ;;  %v4075_v63 = vrot.slane %v4035_v61, %v244_v25 }
 0x1e5   :  { %3228 = vpow2.f32 %v2959_v7 }
 0x1e6   :  { %3230 = vpow2.f32 %v2960_v0  ;;  %v1372_v13 = vpop.f32.mrb[0].mxu0 }
 0x1e7   :  { %v3002_v1 = vadd.f32 %v1372_v13, %v4063_v6  ;;  %v1415_v4 = vpop.f32.mrb[0].mxu1  ;;  %v1374_v14 = vpop.f32.mrb[1].mxu0  ;;  %3232 = vpow2.f32 %v2958_v12  ;;  %v4079_v13 = vrot.slane %v4035_v61, %v240_v59 }
 0x1e8   :  { %v3003_v15 = vadd.f32 %v1374_v14, %v4067_v11  ;;  %v1417_v17 = vpop.f32.mrb[1].mxu1  ;;  %v1376_v19 = vpop.f32.mrb[2].mxu0  ;;  %3234 = vtanh.f32 %v1036_v30 }
 0x1e9   :  { %v2908_v5 = vmul.f32 -1.442695, %v3002_v1  ;;  %v3004_v21 = vadd.f32 %v1376_v19, %v4063_v6  ;;  %v1419_v22 = vpop.f32.mrb[2].mxu1  ;;  %v1378_v23 = vpop.f32.mrb[3].mxu0  ;;  %v3035_v1 = vadd.f32 %v1417_v17, %v4075_v63  ;;  %v3034_v19 = vadd.f32 %v1415_v4, %v4079_v13 }
 0x1ea   :  { %v2909_v24 = vmul.f32 -1.442695, %v3003_v15  ;;  %v1421_v26 = vpop.f32.mrb[3].mxu1  ;;  %v3005_v30 = vadd.f32 %v1378_v23, %v4067_v11  ;;  %v3036_v25 = vadd.f32 %v1419_v22, %v4079_v13 }
 0x1eb   :  { %3236 = vpow2.f32 %v2908_v5  ;;  %v2911_v27 = vmul.f32 -1.442695, %v3004_v21  ;;  %v3037_v61 = vadd.f32 %v1421_v26, %v4075_v63 }
 0x1ec   :  { %3238 = vpow2.f32 %v2961_v16  ;;  %v2912_v16 = vmul.f32 -1.442695, %v3005_v30 }
 0x1ed   :  { %v3225_v29 = vpop.eup %3224  ;;  %3240 = vpow2.f32 %v2909_v24 }
 0x1ee   :  { %v3227_v62 = vpop.eup %3226  ;;  %v2563_v2 = vadd.f32 1.0, %v3225_v29  ;;  %3242 = vtanh.f32 %v1040_v9  ;;  %v2910_v29 = vmul.f32 -1.442695, %v3034_v19 }
 0x1ef   :  { %v3229_v3 = vpop.eup %3228  ;;  %v2564_v7 = vadd.f32 1.0, %v3227_v62  ;;  %3244 = vpow2.f32 %v2911_v27 }
 0x1f0   :  { %v3231_v0 = vpop.eup %3230  ;;  %3246 = vrcp.f32 %v2563_v2  ;;  %v2566_v12 = vadd.f32 1.0, %v3229_v3 }
 0x1f1   :  { %3248 = vrcp.f32 %v2564_v7  ;;  %v2567_v60 = vadd.f32 1.0, %v3231_v0  ;;  %v3233_v14 = vpop.eup %3232  ;;  %v2913_v7 = vmul.f32 -1.442695, %v3036_v25 }
 0x1f2   :  { %3250 = vrcp.f32 %v2566_v12  ;;  %v3235_v9 = vpop.eup %3234  ;;  %v2565_v62 = vadd.f32 1.0, %v3233_v14 }
 0x1f3   :  { %3252 = vrcp.f32 %v2567_v60 }
 0x1f4   :  { %3254 = vtanh.f32 %v3035_v1 }
 0x1f5   :  { %v3237_v15 = vpop.eup %3236  ;;  %3256 = vpow2.f32 %v2912_v16 }
 0x1f6   :  { %v3239_v5 = vpop.eup %3238  ;;  %v1450_v21 = vadd.f32 1.0, %v3237_v15 }
 0x1f7   :  { %v3241_v23 = vpop.eup %3240  ;;  %v2568_v12 = vadd.f32 1.0, %v3239_v5 }
 0x1f8   :  { %v3243_v24 = vpop.eup %3242  ;;  %3258 = vrcp.f32 %v1450_v21  ;;  %v1451_v27 = vadd.f32 1.0, %v3241_v23 }
 0x1f9   :  { %v3245_v17 = vpop.eup %3244 }
 0x1fa   :  { %v3247_v59 = vpop.eup %3246  ;;  %3260 = vrcp.f32 %v1451_v27  ;;  %v1453_v2 = vadd.f32 1.0, %v3245_v17 }
 0x1fb   :  { %v3249_v3 = vpop.eup %3248  ;;  %v2585_v4 = vmul.f32 %v3247_v59, %v3235_v9  ;;  %3262 = vtanh.f32 %v3037_v61 }
 0x1fc   :  { %v3251_v30 = vpop.eup %3250  ;;  %v2583_v0 = vmul.f32 0.0, %v3249_v3  ;;  %3264 = vrcp.f32 %v1453_v2 }
 0x1fd   :  { %v3253_v22 = vpop.eup %3252  ;;  %v2586_v60 = vmul.f32 %v3251_v30, %v3243_v24  ;;  %3266 = vpow2.f32 %v2910_v29 }
 0x1fe   :  { %v2584_v26 = vmul.f32 0.0, %v3253_v22  ;;  %3268 = vrcp.f32 %v2565_v62  ;;  %v2587_v1 = vadd.f32 %v2585_v4, %v2583_v0  ;;  %v3255_v16 = vpop.eup %3254 }
 0x1ff   :  { %3270 = vpow2.f32 %v2913_v7  ;;  %v3257_v15 = vpop.eup %3256 }
 0x200   :  { %3272 = vtanh.f32 %v2587_v1  ;;  %v2588_v14 = vadd.f32 %v2586_v60, %v2584_v26  ;;  %v1454_v9 = vadd.f32 1.0, %v3257_v15 }
 0x201   :  { %3274 = vrcp.f32 %v2568_v12 }
 0x202   :  { %v3259_v19 = vpop.eup %3258  ;;  %3276 = vtanh.f32 %v2588_v14 }
 0x203   :  { %v1472_v21 = vmul.f32 %v3259_v19, %v3255_v16  ;;  %3278 = vrcp.f32 %v1454_v9 }
 0x204   :  { %v3261_v23 = vpop.eup %3260 }
 0x205   :  { %v3263_v25 = vpop.eup %3262  ;;  %v1470_v61 = vmul.f32 0.0, %v3261_v23 }
 0x206   :  { %v3265_v5 = vpop.eup %3264 }
 0x207   :  { %v3267_v24 = vpop.eup %3266  ;;  %v4085_v27 = vadd.f32 %v1472_v21, %v1470_v61  ;;  %v1473_v17 = vmul.f32 %v3265_v5, %v3263_v25 }
 0x208   :  { %v3269_v29 = vpop.eup %3268  ;;  %v1452_v7 = vadd.f32 1.0, %v3267_v24 }
 0x209   :  { %v3271_v59 = vpop.eup %3270 }
 0x20a   :  { %v3273_v62 = vpop.eup %3272  ;;  %v1455_v22 = vadd.f32 1.0, %v3271_v59  ;;  %3280 = vrcp.f32 %v1452_v7 }
 0x20b   :  { %v3275_v2 = vpop.eup %3274  ;;  %v4087_v3 = vmul.f32 %v3273_v62, %v3269_v29  ;;  %3282 = vtanh.f32 %v4085_v27 }
 0x20c   :  { %v3277_v4 = vpop.eup %3276  ;;  %3284 = vrcp.f32 %v1455_v22 }
 0x20d   :  { %v4089_v30 = vmul.f32 %v3277_v4, %v3275_v2  ;;  %v3279_v0 = vpop.eup %3278 }
 0x20e   :  { %v1471_v12 = vmul.f32 0.0, %v3279_v0 }
 0x20f   :  { %v2594_v60 = vpack.c.bf16 %v4089_v30, %v4087_v3  ;;  %v3218_v3 = vld [vmem:[#allocation12 + $0x68] sm:$0xff]  }
 0x210   :  { %v4094_v26 = vadd.f32 %v1473_v17, %v1471_v12  ;;  %v3219_v30 = vld [vmem:[#allocation12 + $0x28] sm:$0xff]  }
 0x212   :  { %3286 = vtanh.f32 %v4094_v26 }
 0x214   :  { %v3281_v1 = vpop.eup %3280 }
 0x215   :  { %v3283_v16 = vpop.eup %3282 }
 0x216   :  { %v3285_v14 = vpop.eup %3284  ;;  %v1478_v19 = vmul.f32 %v3283_v16, %v3281_v1 }
 0x21c   :  { %v3287_v15 = vpop.eup %3286 }
 0x21d   :  { %v1479_v9 = vmul.f32 %v3287_v15, %v3285_v14 }
 0x21f   :  { %v1488_v21 = vpack.c.bf16 %v1479_v9, %v1478_v19 }
 0x221   :  { %1522 = vmatmul.mubr.bf16.vlgmr.msra.gmra.mrb[4].mxu0 %v1488_v21  ;;  %1565 = vmatmul.mubr.bf16.vlgmr.msra.gmra.mrb[4].mxu1 %v1488_v21 }
 0x222   :  { %1641 = vmatpush1.bf16.msra.mxu0 %v3870_v31  ;;  %1684 = vmatpush1.bf16.msra.mxu1 %v3874_v33 }
 0x223   :  { %1642 = vmatprep.subr.bf16.mxu0 %v3872_v32  ;;  %1685 = vmatprep.subr.bf16.mxu1 %v3877_v34 }
 0x224   :  { %1672 = vmatprep.mubr.bf16.mxu0 %v3703_v8  ;;  %1715 = vmatprep.mubr.bf16.mxu1 %v3703_v8 }
 0x226   :  { %1643 = vmatpush1.bf16.msra.mxu0 %v3881_v35  ;;  %1686 = vmatpush1.bf16.msra.mxu1 %v3889_v37 }
 0x227   :  { %1644 = vmatprep.subr.bf16.mxu0 %v3885_v36  ;;  %1687 = vmatprep.subr.bf16.mxu1 %v3892_v38 }
 0x22a   :  { %1645 = vmatpush1.bf16.msra.mxu0 %v3896_v10  ;;  %1688 = vmatpush1.bf16.msra.mxu1 %v3901_v40 }
 0x22b   :  { %1646 = vmatprep.subr.bf16.mxu0 %v3898_v39  ;;  %1689 = vmatprep.subr.bf16.mxu1 %v3905_v41 }
 0x22e   :  { %1647 = vmatpush1.bf16.msra.mxu0 %v3911_v42  ;;  %1690 = vmatpush1.bf16.msra.mxu1 %v3917_v44 }
 0x22f   :  { %1648 = vmatprep.subr.bf16.mxu0 %v3914_v43  ;;  %1691 = vmatprep.subr.bf16.mxu1 %v3920_v45 }
 0x232   :  { %1649 = vmatpush1.bf16.msra.mxu0 %v3923_v28  ;;  %1692 = vmatpush1.bf16.msra.mxu1 %v3929_v47 }
 0x233   :  { %1650 = vmatprep.subr.bf16.mxu0 %v3926_v46  ;;  %1693 = vmatprep.subr.bf16.mxu1 %v3933_v48 }
 0x236   :  { %1651 = vmatpush1.bf16.msra.mxu0 %v3939_v50  ;;  %1694 = vmatpush1.bf16.msra.mxu1 %v3945_v52 }
 0x237   :  { %1652 = vmatprep.subr.bf16.mxu0 %v3942_v51  ;;  %1695 = vmatprep.subr.bf16.mxu1 %v3948_v53 }
 0x23a   :  { %1653 = vmatpush1.bf16.msra.mxu0 %v3951_v49  ;;  %1696 = vmatpush1.bf16.msra.mxu1 %v3957_v55 }
 0x23b   :  { %1654 = vmatprep.subr.bf16.mxu0 %v3955_v54  ;;  %1697 = vmatprep.subr.bf16.mxu1 %v3961_v56 }
 0x23e   :  { %1655 = vmatpush1.bf16.msra.mxu0 %v3967_v57  ;;  %1698 = vmatpush1.bf16.msra.mxu1 %v3971_v58 }
 0x23f   :  { %1791 = vmatprep.subr.bf16.mxu0 %v3840_v18  ;;  %1834 = vmatprep.subr.bf16.mxu1 %v3844_v20 }
 0x2f4   :  { %v1523_v23 = vpop.f32.mrb[4].mxu0  ;;  %v1566_v25 = vpop.f32.mrb[4].mxu1 }
 0x2f5   :  { %v3006_v61 = vadd.f32 %v1523_v23, %v4063_v6  ;;  %v1525_v5 = vpop.f32.mrb[5].mxu0  ;;  %v1568_v24 = vpop.f32.mrb[5].mxu1  ;;  %v3038_v12 = vadd.f32 %v1566_v25, %v4079_v13 }
 0x2f6   :  { %v3007_v17 = vadd.f32 %v1525_v5, %v4067_v11  ;;  %v1527_v29 = vpop.f32.mrb[6].mxu0  ;;  %v1570_v59 = vpop.f32.mrb[6].mxu1  ;;  %v3039_v16 = vadd.f32 %v1568_v24, %v4075_v63 }
 0x2f7   :  { %v2914_v62 = vmul.f32 -1.442695, %v3006_v61  ;;  %v3008_v2 = vadd.f32 %v1527_v29, %v4063_v6  ;;  %v1529_v4 = vpop.f32.mrb[7].mxu0  ;;  %v1572_v7 = vpop.f32.mrb[7].mxu1  ;;  %v3040_v1 = vadd.f32 %v1570_v59, %v4079_v13  ;;  %v2916_v14 = vmul.f32 -1.442695, %v3038_v12 }
 0x2f8   :  { %v2915_v0 = vmul.f32 -1.442695, %v3007_v17  ;;  %v3009_v18 = vadd.f32 %v1529_v4, %v4067_v11  ;;  %v3041_v9 = vadd.f32 %v1572_v7, %v4075_v63 }
 0x2f9   :  { %3288 = vpow2.f32 %v2914_v62  ;;  %v2917_v20 = vmul.f32 -1.442695, %v3008_v2  ;;  %v2919_v15 = vmul.f32 -1.442695, %v3040_v1 }
 0x2fa   :  { %v2918_v22 = vmul.f32 -1.442695, %v3009_v18  ;;  %3290 = vpow2.f32 %v2915_v0 }
 0x2fb   :  { %3292 = vpow2.f32 %v2917_v20 }
 0x2fc   :  { %3294 = vpow2.f32 %v2918_v22 }
 0x2fd   :  { %3296 = vtanh.f32 %v3039_v16 }
 0x2fe   :  { %3298 = vpow2.f32 %v2916_v14 }
 0x2ff   :  { %3300 = vpow2.f32 %v2919_v15 }
 0x303   :  { %v3289_v19 = vpop.eup %3288 }
 0x304   :  { %v1601_v21 = vadd.f32 1.0, %v3289_v19  ;;  %v3291_v23 = vpop.eup %3290 }
 0x305   :  { %v3293_v61 = vpop.eup %3292  ;;  %v1602_v5 = vadd.f32 1.0, %v3291_v23 }
 0x306   :  { %3302 = vrcp.f32 %v1601_v21  ;;  %v1604_v25 = vadd.f32 1.0, %v3293_v61  ;;  %v3295_v17 = vpop.eup %3294 }
 0x307   :  { %3304 = vtanh.f32 %v3041_v9  ;;  %v1605_v29 = vadd.f32 1.0, %v3295_v17  ;;  %v3297_v24 = vpop.eup %3296 }
 0x308   :  { %3306 = vrcp.f32 %v1602_v5  ;;  %v3299_v59 = vpop.eup %3298 }
 0x309   :  { %3308 = vrcp.f32 %v1604_v25  ;;  %v3301_v62 = vpop.eup %3300  ;;  %v1603_v20 = vadd.f32 1.0, %v3299_v59 }
 0x30a   :  { %3310 = vrcp.f32 %v1605_v29  ;;  %v1606_v14 = vadd.f32 1.0, %v3301_v62 }
 0x30b   :  { %3312 = vrcp.f32 %v1603_v20 }
 0x310   :  { %v3303_v2 = vpop.eup %3302 }
 0x311   :  { %v3305_v4 = vpop.eup %3304  ;;  %v1623_v7 = vmul.f32 %v3303_v2, %v3297_v24 }
 0x312   :  { %v3307_v0 = vpop.eup %3306 }
 0x313   :  { %v3309_v18 = vpop.eup %3308  ;;  %v1621_v22 = vmul.f32 %v3307_v0, %v4085_v27 }
 0x314   :  { %v1624_v12 = vmul.f32 %v3309_v18, %v3305_v4  ;;  %v3311_v1 = vpop.eup %3310 }
 0x315   :  { %v4140_v16 = vadd.f32 %v1623_v7, %v1621_v22  ;;  %v1622_v15 = vmul.f32 %v3311_v1, %v4094_v26  ;;  %v3313_v9 = vpop.eup %3312 }
 0x317   :  { %3314 = vtanh.f32 %v4140_v16  ;;  %v4144_v19 = vadd.f32 %v1624_v12, %v1622_v15 }
 0x318   :  { %3316 = vrcp.f32 %v1606_v14 }
 0x319   :  { %3318 = vtanh.f32 %v4144_v19 }
 0x321   :  { %v3315_v21 = vpop.eup %3314 }
 0x322   :  { %v3317_v23 = vpop.eup %3316  ;;  %v1629_v27 = vmul.f32 %v3315_v21, %v3313_v9 }
 0x323   :  { %v3319_v61 = vpop.eup %3318 }
 0x324   :  { %v1630_v5 = vmul.f32 %v3319_v61, %v3317_v23 }
 0x326   :  { %v1639_v25 = vpack.c.bf16 %v1630_v5, %v1629_v27 }
 0x328   :  { %1673 = vmatmul.mubr.bf16.vlgmr.msra.gmra.mrb[8].mxu0 %v1639_v25  ;;  %1716 = vmatmul.mubr.bf16.vlgmr.msra.gmra.mrb[8].mxu1 %v1639_v25 }
 0x329   :  { %1792 = vmatpush1.bf16.msra.mxu0 %v3870_v31  ;;  %1835 = vmatpush1.bf16.msra.mxu1 %v3874_v33  ;;  %v4179_v31 = vld [vmem:[#allocation10 + $0x4] ss:$16 sps:$4 sm:$0xff]  }
 0x32a   :  { %1793 = vmatprep.subr.bf16.mxu0 %v3872_v32  ;;  %1836 = vmatprep.subr.bf16.mxu1 %v3877_v34  ;;  %v4182_v32 = vld [vmem:[#allocation10 + $0xc] ss:$16 sps:$4 sm:$0xff]  }
 0x32b   :  { %1823 = vmatprep.mubr.bf16.mxu0 %v3703_v8  ;;  %1866 = vmatprep.mubr.bf16.mxu1 %v3703_v8 }
 0x32d   :  { %1794 = vmatpush1.bf16.msra.mxu0 %v3881_v35  ;;  %1837 = vmatpush1.bf16.msra.mxu1 %v3889_v37 }
 0x32e   :  { %1795 = vmatprep.subr.bf16.mxu0 %v3885_v36  ;;  %1838 = vmatprep.subr.bf16.mxu1 %v3892_v38 }
 0x331   :  { %1796 = vmatpush1.bf16.msra.mxu0 %v3896_v10  ;;  %1839 = vmatpush1.bf16.msra.mxu1 %v3901_v40 }
 0x332   :  { %1797 = vmatprep.subr.bf16.mxu0 %v3898_v39  ;;  %1840 = vmatprep.subr.bf16.mxu1 %v3905_v41 }
 0x335   :  { %1798 = vmatpush1.bf16.msra.mxu0 %v3911_v42  ;;  %1841 = vmatpush1.bf16.msra.mxu1 %v3917_v44 }
 0x336   :  { %1799 = vmatprep.subr.bf16.mxu0 %v3914_v43  ;;  %1842 = vmatprep.subr.bf16.mxu1 %v3920_v45 }
 0x339   :  { %1800 = vmatpush1.bf16.msra.mxu0 %v3923_v28  ;;  %1843 = vmatpush1.bf16.msra.mxu1 %v3929_v47 }
 0x33a   :  { %1801 = vmatprep.subr.bf16.mxu0 %v3926_v46  ;;  %1844 = vmatprep.subr.bf16.mxu1 %v3933_v48 }
 0x33d   :  { %1802 = vmatpush1.bf16.msra.mxu0 %v3939_v50  ;;  %1845 = vmatpush1.bf16.msra.mxu1 %v3945_v52 }
 0x33e   :  { %1803 = vmatprep.subr.bf16.mxu0 %v3942_v51  ;;  %1846 = vmatprep.subr.bf16.mxu1 %v3948_v53 }
 0x341   :  { %1804 = vmatpush1.bf16.msra.mxu0 %v3951_v49  ;;  %1847 = vmatpush1.bf16.msra.mxu1 %v3957_v55 }
 0x342   :  { %1805 = vmatprep.subr.bf16.mxu0 %v3955_v54  ;;  %1848 = vmatprep.subr.bf16.mxu1 %v3961_v56 }
 0x345   :  { %1806 = vmatpush1.bf16.msra.mxu0 %v3967_v57  ;;  %1849 = vmatpush1.bf16.msra.mxu1 %v3971_v58 }
 0x346   :  { %1942 = vmatprep.subr.bf16.mxu0 %v4179_v31  ;;  %1985 = vmatprep.subr.bf16.mxu1 %v4182_v32 }
 0x3fb   :  { %v1674_v33 = vpop.f32.mrb[8].mxu0  ;;  %v1717_v34 = vpop.f32.mrb[8].mxu1 }
 0x3fc   :  { %v3010_v35 = vadd.f32 %v1674_v33, %v4063_v6  ;;  %v1676_v36 = vpop.f32.mrb[9].mxu0  ;;  %v1719_v37 = vpop.f32.mrb[9].mxu1  ;;  %v3042_v47 = vadd.f32 %v1717_v34, %v4079_v13  ;;  %v4201_v33 = vld [vmem:[#allocation10] ss:$16 sps:$4 sm:$0xff]   ;;  %v4207_v34 = vld [vmem:[#allocation10 + $0x24] ss:$16 sps:$4 sm:$0xff]  }
 0x3fd   :  { %v3011_v38 = vadd.f32 %v1676_v36, %v4067_v11  ;;  %v1678_v10 = vpop.f32.mrb[10].mxu0  ;;  %v1721_v39 = vpop.f32.mrb[10].mxu1  ;;  %v3043_v50 = vadd.f32 %v1719_v37, %v4075_v63  ;;  %v4215_v36 = vld [vmem:[#allocation10 + $0x20] ss:$16 sps:$4 sm:$0xff]   ;;  %v4218_v37 = vld [vmem:[#allocation10 + $0x28] ss:$16 sps:$4 sm:$0xff]  }
 0x3fe   :  { %v2920_v40 = vmul.f32 -1.442695, %v3010_v35  ;;  %v3012_v41 = vadd.f32 %v1678_v10, %v4063_v6  ;;  %v1680_v42 = vpop.f32.mrb[11].mxu0  ;;  %v1723_v43 = vpop.f32.mrb[11].mxu1  ;;  %v3044_v48 = vadd.f32 %v1721_v39, %v4079_v13  ;;  %v2922_v51 = vmul.f32 -1.442695, %v3042_v47 }
 0x3ff   :  { %v2921_v44 = vmul.f32 -1.442695, %v3011_v38  ;;  %v3013_v45 = vadd.f32 %v1680_v42, %v4067_v11  ;;  %v3045_v49 = vadd.f32 %v1723_v43, %v4075_v63  ;;  %v4210_v35 = vld [vmem:[#allocation10 + $0x2c] ss:$16 sps:$4 sm:$0xff]   ;;  %v4221_v38 = vld [vmem:[#allocation10 + $0x44] ss:$16 sps:$4 sm:$0xff]  }
 0x400   :  { %3320 = vpow2.f32 %v2920_v40  ;;  %v2923_v28 = vmul.f32 -1.442695, %v3012_v41  ;;  %v2925_v52 = vmul.f32 -1.442695, %v3044_v48  ;;  %v4224_v10 = vld [vmem:[#allocation10 + $0x4c] ss:$16 sps:$4 sm:$0xff]  }
 0x401   :  { %v2924_v46 = vmul.f32 -1.442695, %v3013_v45  ;;  %3322 = vpow2.f32 %v2921_v44  ;;  %v4227_v39 = vld [vmem:[#allocation10 + $0x40] ss:$16 sps:$4 sm:$0xff]   ;;  %v4230_v40 = vld [vmem:[#allocation10 + $0x48] ss:$16 sps:$4 sm:$0xff]  }
 0x402   :  { %3324 = vpow2.f32 %v2923_v28  ;;  %v4233_v41 = vld [vmem:[#allocation10 + $0x64] ss:$16 sps:$4 sm:$0xff]   ;;  %v4236_v42 = vld [vmem:[#allocation10 + $0x6c] ss:$16 sps:$4 sm:$0xff]   ;;  %v4239_v43 = vld [vmem:[#allocation10 + $0x60] ss:$16 sps:$4 sm:$0xff]  }
 0x403   :  { %3326 = vpow2.f32 %v2924_v46  ;;  %v4242_v44 = vld [vmem:[#allocation10 + $0x68] ss:$16 sps:$4 sm:$0xff]   ;;  %v4245_v45 = vld [vmem:[#allocation10 + $0x84] ss:$16 sps:$4 sm:$0xff]   ;;  %v4248_v28 = vld [vmem:[#allocation10 + $0x8c] ss:$16 sps:$4 sm:$0xff]  }
 0x404   :  { %3328 = vtanh.f32 %v3043_v50  ;;  %v4251_v46 = vld [vmem:[#allocation10 + $0x80] ss:$16 sps:$4 sm:$0xff]   ;;  %v4254_v47 = vld [vmem:[#allocation10 + $0x88] ss:$16 sps:$4 sm:$0xff]   ;;  %v4257_v48 = vld [vmem:[#allocation10 + $0xa4] ss:$16 sps:$4 sm:$0xff]  }
 0x405   :  { %3330 = vpow2.f32 %v2922_v51  ;;  %v4260_v50 = vld [vmem:[#allocation10 + $0xac] ss:$16 sps:$4 sm:$0xff]   ;;  %v4263_v51 = vld [vmem:[#allocation10 + $0xa0] ss:$16 sps:$4 sm:$0xff]  }
 0x406   :  { %3332 = vpow2.f32 %v2925_v52  ;;  %v4266_v52 = vld [vmem:[#allocation10 + $0xa8] ss:$16 sps:$4 sm:$0xff]  }
 0x40a   :  { %v3321_v53 = vpop.eup %3320 }
 0x40b   :  { %v1752_v54 = vadd.f32 1.0, %v3321_v53  ;;  %v3323_v55 = vpop.eup %3322  ;;  %v4269_v53 = vld [vmem:[#allocation10 + $0xc4] ss:$16 sps:$4 sm:$0xff]  }
 0x40c   :  { %v3325_v56 = vpop.eup %3324  ;;  %v1753_v57 = vadd.f32 1.0, %v3323_v55  ;;  %v4278_v55 = vld [vmem:[#allocation10 + $0xc8] ss:$16 sps:$4 sm:$0xff]  }
 0x40d   :  { %3334 = vrcp.f32 %v1752_v54  ;;  %v1755_v58 = vadd.f32 1.0, %v3325_v56  ;;  %v3327_v26 = vpop.eup %3326  ;;  %v4275_v54 = vld [vmem:[#allocation10 + $0xc0] ss:$16 sps:$4 sm:$0xff]   ;;  %v4281_v56 = vld [vmem:[#allocation10 + $0xe4] ss:$16 sps:$4 sm:$0xff]  }
 0x40e   :  { %3336 = vtanh.f32 %v3045_v49  ;;  %v1756_v17 = vadd.f32 1.0, %v3327_v26  ;;  %v3329_v29 = vpop.eup %3328  ;;  %v4272_v49 = vld [vmem:[#allocation10 + $0xcc] ss:$16 sps:$4 sm:$0xff]   ;;  %v4290_v26 = vld [vmem:[#allocation10 + $0xe8] ss:$16 sps:$4 sm:$0xff]  }
 0x40f   :  { %3338 = vrcp.f32 %v1753_v57  ;;  %v3331_v24 = vpop.eup %3330  ;;  %v4284_v57 = vld [vmem:[#allocation10 + $0xec] ss:$16 sps:$4 sm:$0xff]  }
 0x410   :  { %3340 = vrcp.f32 %v1755_v58  ;;  %v3333_v59 = vpop.eup %3332  ;;  %v1754_v18 = vadd.f32 1.0, %v3331_v24  ;;  %v4287_v58 = vld [vmem:[#allocation10 + $0xe0] ss:$16 sps:$4 sm:$0xff]  }
 0x411   :  { %3342 = vrcp.f32 %v1756_v17  ;;  %v1757_v14 = vadd.f32 1.0, %v3333_v59 }
 0x412   :  { %3344 = vrcp.f32 %v1754_v18 }
 0x417   :  { %v3335_v62 = vpop.eup %3334 }
 0x418   :  { %v3337_v2 = vpop.eup %3336  ;;  %v1774_v4 = vmul.f32 %v3335_v62, %v3329_v29 }
 0x419   :  { %v3339_v7 = vpop.eup %3338 }
 0x41a   :  { %v3341_v0 = vpop.eup %3340  ;;  %v1772_v20 = vmul.f32 %v3339_v7, %v4140_v16 }
 0x41b   :  { %v1775_v22 = vmul.f32 %v3341_v0, %v3337_v2  ;;  %v3343_v12 = vpop.eup %3342 }
 0x41c   :  { %v4194_v1 = vadd.f32 %v1774_v4, %v1772_v20  ;;  %v1773_v15 = vmul.f32 %v3343_v12, %v4144_v19  ;;  %v3345_v21 = vpop.eup %3344  ;;  %v4204_v19 = vld [vmem:[#allocation10 + $0x8] ss:$16 sps:$4 sm:$0xff]  }
 0x41e   :  { %3346 = vtanh.f32 %v4194_v1  ;;  %v4198_v9 = vadd.f32 %v1775_v22, %v1773_v15 }
 0x41f   :  { %3348 = vrcp.f32 %v1757_v14 }
 0x420   :  { %3350 = vtanh.f32 %v4198_v9 }
 0x428   :  { %v3347_v23 = vpop.eup %3346 }
 0x429   :  { %v3349_v61 = vpop.eup %3348  ;;  %v1780_v16 = vmul.f32 %v3347_v23, %v3345_v21 }
 0x42a   :  { %v3351_v27 = vpop.eup %3350 }
 0x42b   :  { %v1781_v5 = vmul.f32 %v3351_v27, %v3349_v61 }
 0x42d   :  { %v1790_v25 = vpack.c.bf16 %v1781_v5, %v1780_v16 }
 0x42f   :  { %1824 = vmatmul.mubr.bf16.vlgmr.msra.gmra.mrb[12].mxu0 %v1790_v25  ;;  %1867 = vmatmul.mubr.bf16.vlgmr.msra.gmra.mrb[12].mxu1 %v1790_v25 }
 0x430   :  { %1943 = vmatpush1.bf16.msra.mxu0 %v4201_v33  ;;  %1986 = vmatpush1.bf16.msra.mxu1 %v4204_v19 }
 0x431   :  { %1944 = vmatprep.subr.bf16.mxu0 %v4207_v34  ;;  %1987 = vmatprep.subr.bf16.mxu1 %v4210_v35 }
 0x432   :  { %1974 = vmatprep.mubr.bf16.mxu0 %v3703_v8  ;;  %2017 = vmatprep.mubr.bf16.mxu1 %v3703_v8 }
 0x434   :  { %1945 = vmatpush1.bf16.msra.mxu0 %v4215_v36  ;;  %1988 = vmatpush1.bf16.msra.mxu1 %v4218_v37 }
 0x435   :  { %1946 = vmatprep.subr.bf16.mxu0 %v4221_v38  ;;  %1989 = vmatprep.subr.bf16.mxu1 %v4224_v10 }
 0x438   :  { %1947 = vmatpush1.bf16.msra.mxu0 %v4227_v39  ;;  %1990 = vmatpush1.bf16.msra.mxu1 %v4230_v40 }
 0x439   :  { %1948 = vmatprep.subr.bf16.mxu0 %v4233_v41  ;;  %1991 = vmatprep.subr.bf16.mxu1 %v4236_v42 }
 0x43c   :  { %1949 = vmatpush1.bf16.msra.mxu0 %v4239_v43  ;;  %1992 = vmatpush1.bf16.msra.mxu1 %v4242_v44 }
 0x43d   :  { %1950 = vmatprep.subr.bf16.mxu0 %v4245_v45  ;;  %1993 = vmatprep.subr.bf16.mxu1 %v4248_v28 }
 0x440   :  { %1951 = vmatpush1.bf16.msra.mxu0 %v4251_v46  ;;  %1994 = vmatpush1.bf16.msra.mxu1 %v4254_v47 }
 0x441   :  { %1952 = vmatprep.subr.bf16.mxu0 %v4257_v48  ;;  %1995 = vmatprep.subr.bf16.mxu1 %v4260_v50 }
 0x444   :  { %1953 = vmatpush1.bf16.msra.mxu0 %v4263_v51  ;;  %1996 = vmatpush1.bf16.msra.mxu1 %v4266_v52 }
 0x445   :  { %1954 = vmatprep.subr.bf16.mxu0 %v4269_v53  ;;  %1997 = vmatprep.subr.bf16.mxu1 %v4272_v49 }
 0x448   :  { %1955 = vmatpush1.bf16.msra.mxu0 %v4275_v54  ;;  %1998 = vmatpush1.bf16.msra.mxu1 %v4278_v55 }
 0x449   :  { %1956 = vmatprep.subr.bf16.mxu0 %v4281_v56  ;;  %1999 = vmatprep.subr.bf16.mxu1 %v4284_v57 }
 0x44c   :  { %1957 = vmatpush1.bf16.msra.mxu0 %v4287_v58  ;;  %2000 = vmatpush1.bf16.msra.mxu1 %v4290_v26 }
 0x44d   :  { %2093 = vmatprep.subr.bf16.mxu0 %v4179_v31  ;;  %2136 = vmatprep.subr.bf16.mxu1 %v4182_v32 }
 0x502   :  { %v1825_v17 = vpop.f32.mrb[12].mxu0  ;;  %v1868_v29 = vpop.f32.mrb[12].mxu1 }
 0x503   :  { %v3014_v24 = vadd.f32 %v1825_v17, %v4063_v6  ;;  %v1827_v59 = vpop.f32.mrb[13].mxu0  ;;  %v1870_v62 = vpop.f32.mrb[13].mxu1  ;;  %v3046_v23 = vadd.f32 %v1868_v29, %v4079_v13 }
 0x504   :  { %v3015_v2 = vadd.f32 %v1827_v59, %v4067_v11  ;;  %v1829_v4 = vpop.f32.mrb[14].mxu0  ;;  %v1872_v7 = vpop.f32.mrb[14].mxu1  ;;  %v3047_v27 = vadd.f32 %v1870_v62, %v4075_v63 }
 0x505   :  { %v2926_v0 = vmul.f32 -1.442695, %v3014_v24  ;;  %v3016_v18 = vadd.f32 %v1829_v4, %v4063_v6  ;;  %v1831_v20 = vpop.f32.mrb[15].mxu0  ;;  %v1874_v22 = vpop.f32.mrb[15].mxu1  ;;  %v3048_v61 = vadd.f32 %v1872_v7, %v4079_v13  ;;  %v2928_v16 = vmul.f32 -1.442695, %v3046_v23 }
 0x506   :  { %v2927_v12 = vmul.f32 -1.442695, %v3015_v2  ;;  %v3017_v14 = vadd.f32 %v1831_v20, %v4067_v11  ;;  %v3049_v17 = vadd.f32 %v1874_v22, %v4075_v63 }
 0x507   :  { %3352 = vpow2.f32 %v2926_v0  ;;  %v2929_v15 = vmul.f32 -1.442695, %v3016_v18  ;;  %v2931_v5 = vmul.f32 -1.442695, %v3048_v61 }
 0x508   :  { %v2930_v21 = vmul.f32 -1.442695, %v3017_v14  ;;  %3354 = vpow2.f32 %v2927_v12 }
 0x509   :  { %3356 = vpow2.f32 %v2929_v15 }
 0x50a   :  { %3358 = vpow2.f32 %v2930_v21 }
 0x50b   :  { %3360 = vtanh.f32 %v3047_v27 }
 0x50c   :  { %3362 = vpow2.f32 %v2928_v16 }
 0x50d   :  { %3364 = vpow2.f32 %v2931_v5 }
 0x511   :  { %v3353_v25 = vpop.eup %3352 }
 0x512   :  { %v1903_v24 = vadd.f32 1.0, %v3353_v25  ;;  %v3355_v59 = vpop.eup %3354 }
 0x513   :  { %v3357_v2 = vpop.eup %3356  ;;  %v1904_v4 = vadd.f32 1.0, %v3355_v59 }
 0x514   :  { %3366 = vrcp.f32 %v1903_v24  ;;  %v1906_v29 = vadd.f32 1.0, %v3357_v2  ;;  %v3359_v0 = vpop.eup %3358 }
 0x515   :  { %3368 = vtanh.f32 %v3049_v17  ;;  %v1907_v7 = vadd.f32 1.0, %v3359_v0  ;;  %v3361_v62 = vpop.eup %3360 }
 0x516   :  { %3370 = vrcp.f32 %v1904_v4  ;;  %v3363_v18 = vpop.eup %3362 }
 0x517   :  { %3372 = vrcp.f32 %v1906_v29  ;;  %v3365_v20 = vpop.eup %3364  ;;  %v1905_v23 = vadd.f32 1.0, %v3363_v18 }
 0x518   :  { %3374 = vrcp.f32 %v1907_v7  ;;  %v1908_v25 = vadd.f32 1.0, %v3365_v20 }
 0x519   :  { %3376 = vrcp.f32 %v1905_v23 }
 0x51e   :  { %v3367_v12 = vpop.eup %3366 }
 0x51f   :  { %v3369_v14 = vpop.eup %3368  ;;  %v1925_v22 = vmul.f32 %v3367_v12, %v3361_v62 }
 0x520   :  { %v3371_v15 = vpop.eup %3370 }
 0x521   :  { %v3373_v21 = vpop.eup %3372  ;;  %v1923_v61 = vmul.f32 %v3371_v15, %v4194_v1 }
 0x522   :  { %v1926_v27 = vmul.f32 %v3373_v21, %v3369_v14  ;;  %v3375_v16 = vpop.eup %3374 }
 0x523   :  { %v4304_v5 = vadd.f32 %v1925_v22, %v1923_v61  ;;  %v1924_v17 = vmul.f32 %v3375_v16, %v4198_v9  ;;  %v3377_v59 = vpop.eup %3376 }
 0x525   :  { %3378 = vtanh.f32 %v4304_v5  ;;  %v4308_v24 = vadd.f32 %v1926_v27, %v1924_v17 }
 0x526   :  { %3380 = vrcp.f32 %v1908_v25 }
 0x527   :  { %3382 = vtanh.f32 %v4308_v24 }
 0x52f   :  { %v3379_v2 = vpop.eup %3378 }
 0x530   :  { %v3381_v4 = vpop.eup %3380  ;;  %v1931_v1 = vmul.f32 %v3379_v2, %v3377_v59 }
 0x531   :  { %v3383_v29 = vpop.eup %3382 }
 0x532   :  { %v1932_v0 = vmul.f32 %v3383_v29, %v3381_v4 }
 0x534   :  { %v1941_v7 = vpack.c.bf16 %v1932_v0, %v1931_v1 }
 0x536   :  { %1975 = vmatmul.mubr.bf16.vlgmr.msra.gmra.mrb[16].mxu0 %v1941_v7  ;;  %2018 = vmatmul.mubr.bf16.vlgmr.msra.gmra.mrb[16].mxu1 %v1941_v7 }
 0x537   :  { %2094 = vmatpush1.bf16.msra.mxu0 %v4201_v33  ;;  %2137 = vmatpush1.bf16.msra.mxu1 %v4204_v19 }
 0x538   :  { %2095 = vmatprep.subr.bf16.mxu0 %v4207_v34  ;;  %2138 = vmatprep.subr.bf16.mxu1 %v4210_v35 }
 0x539   :  { %2125 = vmatprep.mubr.bf16.mxu0 %v3703_v8  ;;  %2168 = vmatprep.mubr.bf16.mxu1 %v3703_v8 }
 0x53b   :  { %2096 = vmatpush1.bf16.msra.mxu0 %v4215_v36  ;;  %2139 = vmatpush1.bf16.msra.mxu1 %v4218_v37 }
 0x53c   :  { %2097 = vmatprep.subr.bf16.mxu0 %v4221_v38  ;;  %2140 = vmatprep.subr.bf16.mxu1 %v4224_v10 }
 0x53f   :  { %2098 = vmatpush1.bf16.msra.mxu0 %v4227_v39  ;;  %2141 = vmatpush1.bf16.msra.mxu1 %v4230_v40 }
 0x540   :  { %2099 = vmatprep.subr.bf16.mxu0 %v4233_v41  ;;  %2142 = vmatprep.subr.bf16.mxu1 %v4236_v42 }
 0x543   :  { %2100 = vmatpush1.bf16.msra.mxu0 %v4239_v43  ;;  %2143 = vmatpush1.bf16.msra.mxu1 %v4242_v44 }
 0x544   :  { %2101 = vmatprep.subr.bf16.mxu0 %v4245_v45  ;;  %2144 = vmatprep.subr.bf16.mxu1 %v4248_v28 }
 0x547   :  { %2102 = vmatpush1.bf16.msra.mxu0 %v4251_v46  ;;  %2145 = vmatpush1.bf16.msra.mxu1 %v4254_v47 }
 0x548   :  { %2103 = vmatprep.subr.bf16.mxu0 %v4257_v48  ;;  %2146 = vmatprep.subr.bf16.mxu1 %v4260_v50 }
 0x54b   :  { %2104 = vmatpush1.bf16.msra.mxu0 %v4263_v51  ;;  %2147 = vmatpush1.bf16.msra.mxu1 %v4266_v52 }
 0x54c   :  { %2105 = vmatprep.subr.bf16.mxu0 %v4269_v53  ;;  %2148 = vmatprep.subr.bf16.mxu1 %v4272_v49 }
 0x54f   :  { %2106 = vmatpush1.bf16.msra.mxu0 %v4275_v54  ;;  %2149 = vmatpush1.bf16.msra.mxu1 %v4278_v55 }
 0x550   :  { %2107 = vmatprep.subr.bf16.mxu0 %v4281_v56  ;;  %2150 = vmatprep.subr.bf16.mxu1 %v4284_v57 }
 0x553   :  { %2108 = vmatpush1.bf16.msra.mxu0 %v4287_v58  ;;  %2151 = vmatpush1.bf16.msra.mxu1 %v4290_v26 }
 0x554   :  { %2244 = vmatprep.subr.bf16.mxu0 %v4179_v31  ;;  %2287 = vmatprep.subr.bf16.mxu1 %v4182_v32 }
 0x609   :  { %v1976_v9 = vpop.f32.mrb[16].mxu0  ;;  %v2019_v62 = vpop.f32.mrb[16].mxu1 }
 0x60a   :  { %v3018_v18 = vadd.f32 %v1976_v9, %v4063_v6  ;;  %v1978_v20 = vpop.f32.mrb[17].mxu0  ;;  %v2021_v12 = vpop.f32.mrb[17].mxu1  ;;  %v3050_v2 = vadd.f32 %v2019_v62, %v4079_v13 }
 0x60b   :  { %v3019_v14 = vadd.f32 %v1978_v20, %v4067_v11  ;;  %v1980_v22 = vpop.f32.mrb[18].mxu0  ;;  %v2023_v15 = vpop.f32.mrb[18].mxu1  ;;  %v3051_v29 = vadd.f32 %v2021_v12, %v4075_v63 }
 0x60c   :  { %v2932_v21 = vmul.f32 -1.442695, %v3018_v18  ;;  %v3020_v23 = vadd.f32 %v1980_v22, %v4063_v6  ;;  %v1982_v61 = vpop.f32.mrb[19].mxu0  ;;  %v2025_v27 = vpop.f32.mrb[19].mxu1  ;;  %v3052_v4 = vadd.f32 %v2023_v15, %v4079_v13  ;;  %v2934_v1 = vmul.f32 -1.442695, %v3050_v2 }
 0x60d   :  { %v2933_v16 = vmul.f32 -1.442695, %v3019_v14  ;;  %v3021_v25 = vadd.f32 %v1982_v61, %v4067_v11  ;;  %v3053_v9 = vadd.f32 %v2025_v27, %v4075_v63 }
 0x60e   :  { %3384 = vpow2.f32 %v2932_v21  ;;  %v2935_v17 = vmul.f32 -1.442695, %v3020_v23  ;;  %v2937_v0 = vmul.f32 -1.442695, %v3052_v4 }
 0x60f   :  { %v2936_v59 = vmul.f32 -1.442695, %v3021_v25  ;;  %3386 = vpow2.f32 %v2933_v16 }
 0x610   :  { %3388 = vpow2.f32 %v2935_v17 }
 0x611   :  { %3390 = vpow2.f32 %v2936_v59 }
 0x612   :  { %3392 = vtanh.f32 %v3051_v29 }
 0x613   :  { %3394 = vpow2.f32 %v2934_v1 }
 0x614   :  { %3396 = vpow2.f32 %v2937_v0 }
 0x618   :  { %v3385_v7 = vpop.eup %3384 }
 0x619   :  { %v2054_v18 = vadd.f32 1.0, %v3385_v7  ;;  %v3387_v20 = vpop.eup %3386 }
 0x61a   :  { %v3389_v14 = vpop.eup %3388  ;;  %v2055_v22 = vadd.f32 1.0, %v3387_v20 }
 0x61b   :  { %3398 = vrcp.f32 %v2054_v18  ;;  %v2057_v62 = vadd.f32 1.0, %v3389_v14  ;;  %v3391_v21 = vpop.eup %3390 }
 0x61c   :  { %3400 = vtanh.f32 %v3053_v9  ;;  %v2058_v15 = vadd.f32 1.0, %v3391_v21  ;;  %v3393_v12 = vpop.eup %3392 }
 0x61d   :  { %3402 = vrcp.f32 %v2055_v22  ;;  %v3395_v23 = vpop.eup %3394 }
 0x61e   :  { %3404 = vrcp.f32 %v2057_v62  ;;  %v3397_v61 = vpop.eup %3396  ;;  %v2056_v2 = vadd.f32 1.0, %v3395_v23 }
 0x61f   :  { %3406 = vrcp.f32 %v2058_v15  ;;  %v2059_v7 = vadd.f32 1.0, %v3397_v61 }
 0x620   :  { %3408 = vrcp.f32 %v2056_v2 }
 0x625   :  { %v3399_v16 = vpop.eup %3398 }
 0x626   :  { %v3401_v25 = vpop.eup %3400  ;;  %v2076_v27 = vmul.f32 %v3399_v16, %v3393_v12 }
 0x627   :  { %v3403_v17 = vpop.eup %3402 }
 0x628   :  { %v3405_v59 = vpop.eup %3404  ;;  %v2074_v4 = vmul.f32 %v3403_v17, %v4304_v5 }
 0x629   :  { %v2077_v29 = vmul.f32 %v3405_v59, %v3401_v25  ;;  %v3407_v1 = vpop.eup %3406 }
 0x62a   :  { %v4354_v0 = vadd.f32 %v2076_v27, %v2074_v4  ;;  %v2075_v9 = vmul.f32 %v3407_v1, %v4308_v24  ;;  %v3409_v20 = vpop.eup %3408 }
 0x62c   :  { %3410 = vtanh.f32 %v4354_v0  ;;  %v4358_v18 = vadd.f32 %v2077_v29, %v2075_v9 }
 0x62d   :  { %3412 = vrcp.f32 %v2059_v7 }
 0x62e   :  { %3414 = vtanh.f32 %v4358_v18 }
 0x636   :  { %v3411_v14 = vpop.eup %3410 }
 0x637   :  { %v3413_v22 = vpop.eup %3412  ;;  %v2082_v5 = vmul.f32 %v3411_v14, %v3409_v20 }
 0x638   :  { %v3415_v62 = vpop.eup %3414 }
 0x639   :  { %v2083_v21 = vmul.f32 %v3415_v62, %v3413_v22 }
 0x63b   :  { %v2092_v15 = vpack.c.bf16 %v2083_v21, %v2082_v5 }
 0x63d   :  { %2126 = vmatmul.mubr.bf16.vlgmr.msra.gmra.mrb[20].mxu0 %v2092_v15  ;;  %2169 = vmatmul.mubr.bf16.vlgmr.msra.gmra.mrb[20].mxu1 %v2092_v15 }
 0x63e   :  { %2245 = vmatpush1.bf16.msra.mxu0 %v4201_v33  ;;  %2288 = vmatpush1.bf16.msra.mxu1 %v4204_v19 }
 0x63f   :  { %2246 = vmatprep.subr.bf16.mxu0 %v4207_v34  ;;  %2289 = vmatprep.subr.bf16.mxu1 %v4210_v35 }
 0x640   :  { %2276 = vmatprep.mubr.bf16.mxu0 %v3703_v8  ;;  %2319 = vmatprep.mubr.bf16.mxu1 %v3703_v8 }
 0x642   :  { %2247 = vmatpush1.bf16.msra.mxu0 %v4215_v36  ;;  %2290 = vmatpush1.bf16.msra.mxu1 %v4218_v37 }
 0x643   :  { %2248 = vmatprep.subr.bf16.mxu0 %v4221_v38  ;;  %2291 = vmatprep.subr.bf16.mxu1 %v4224_v10 }
 0x646   :  { %2249 = vmatpush1.bf16.msra.mxu0 %v4227_v39  ;;  %2292 = vmatpush1.bf16.msra.mxu1 %v4230_v40 }
 0x647   :  { %2250 = vmatprep.subr.bf16.mxu0 %v4233_v41  ;;  %2293 = vmatprep.subr.bf16.mxu1 %v4236_v42 }
 0x64a   :  { %2251 = vmatpush1.bf16.msra.mxu0 %v4239_v43  ;;  %2294 = vmatpush1.bf16.msra.mxu1 %v4242_v44 }
 0x64b   :  { %2252 = vmatprep.subr.bf16.mxu0 %v4245_v45  ;;  %2295 = vmatprep.subr.bf16.mxu1 %v4248_v28 }
 0x64e   :  { %2253 = vmatpush1.bf16.msra.mxu0 %v4251_v46  ;;  %2296 = vmatpush1.bf16.msra.mxu1 %v4254_v47 }
 0x64f   :  { %2254 = vmatprep.subr.bf16.mxu0 %v4257_v48  ;;  %2297 = vmatprep.subr.bf16.mxu1 %v4260_v50 }
 0x652   :  { %2255 = vmatpush1.bf16.msra.mxu0 %v4263_v51  ;;  %2298 = vmatpush1.bf16.msra.mxu1 %v4266_v52 }
 0x653   :  { %2256 = vmatprep.subr.bf16.mxu0 %v4269_v53  ;;  %2299 = vmatprep.subr.bf16.mxu1 %v4272_v49 }
 0x656   :  { %2257 = vmatpush1.bf16.msra.mxu0 %v4275_v54  ;;  %2300 = vmatpush1.bf16.msra.mxu1 %v4278_v55 }
 0x657   :  { %2258 = vmatprep.subr.bf16.mxu0 %v4281_v56  ;;  %2301 = vmatprep.subr.bf16.mxu1 %v4284_v57 }
 0x65a   :  { %2259 = vmatpush1.bf16.msra.mxu0 %v4287_v58  ;;  %2302 = vmatpush1.bf16.msra.mxu1 %v4290_v26 }
 0x65b   :  { %2395 = vmatprep.subr.bf16.mxu0 %v4179_v31  ;;  %2438 = vmatprep.subr.bf16.mxu1 %v4182_v32 }
 0x710   :  { %v2127_v24 = vpop.f32.mrb[20].mxu0  ;;  %v2170_v12 = vpop.f32.mrb[20].mxu1 }
 0x711   :  { %v3022_v23 = vadd.f32 %v2127_v24, %v4063_v6  ;;  %v2129_v61 = vpop.f32.mrb[21].mxu0  ;;  %v2172_v16 = vpop.f32.mrb[21].mxu1  ;;  %v3054_v9 = vadd.f32 %v2170_v12, %v4079_v13 }
 0x712   :  { %v3023_v25 = vadd.f32 %v2129_v61, %v4067_v11  ;;  %v2131_v27 = vpop.f32.mrb[22].mxu0  ;;  %v2174_v17 = vpop.f32.mrb[22].mxu1  ;;  %v3055_v14 = vadd.f32 %v2172_v16, %v4075_v63 }
 0x713   :  { %v2938_v59 = vmul.f32 -1.442695, %v3022_v23  ;;  %v3024_v2 = vadd.f32 %v2131_v27, %v4063_v6  ;;  %v2133_v4 = vpop.f32.mrb[23].mxu0  ;;  %v2176_v29 = vpop.f32.mrb[23].mxu1  ;;  %v3056_v20 = vadd.f32 %v2174_v17, %v4079_v13  ;;  %v2940_v22 = vmul.f32 -1.442695, %v3054_v9 }
 0x714   :  { %v2939_v1 = vmul.f32 -1.442695, %v3023_v25  ;;  %v3025_v31 = vadd.f32 %v2133_v4, %v4067_v11  ;;  %v3057_v21 = vadd.f32 %v2176_v29, %v4075_v63 }
 0x715   :  { %3416 = vpow2.f32 %v2938_v59  ;;  %v2941_v32 = vmul.f32 -1.442695, %v3024_v2  ;;  %v2943_v62 = vmul.f32 -1.442695, %v3056_v20 }
 0x716   :  { %v2942_v7 = vmul.f32 -1.442695, %v3025_v31  ;;  %3418 = vpow2.f32 %v2939_v1 }
 0x717   :  { %3420 = vpow2.f32 %v2941_v32 }
 0x718   :  { %3422 = vpow2.f32 %v2942_v7 }
 0x719   :  { %3424 = vtanh.f32 %v3055_v14 }
 0x71a   :  { %3426 = vpow2.f32 %v2940_v22 }
 0x71b   :  { %3428 = vpow2.f32 %v2943_v62 }
 0x71f   :  { %v3417_v5 = vpop.eup %3416 }
 0x720   :  { %v2205_v15 = vadd.f32 1.0, %v3417_v5  ;;  %v3419_v24 = vpop.eup %3418 }
 0x721   :  { %v3421_v23 = vpop.eup %3420  ;;  %v2206_v61 = vadd.f32 1.0, %v3419_v24 }
 0x722   :  { %3430 = vrcp.f32 %v2205_v15  ;;  %v2208_v12 = vadd.f32 1.0, %v3421_v23  ;;  %v3423_v25 = vpop.eup %3422 }
 0x723   :  { %3432 = vtanh.f32 %v3057_v21  ;;  %v2209_v27 = vadd.f32 1.0, %v3423_v25  ;;  %v3425_v16 = vpop.eup %3424 }
 0x724   :  { %3434 = vrcp.f32 %v2206_v61  ;;  %v3427_v17 = vpop.eup %3426 }
 0x725   :  { %3436 = vrcp.f32 %v2208_v12  ;;  %v3429_v59 = vpop.eup %3428  ;;  %v2207_v32 = vadd.f32 1.0, %v3427_v17 }
 0x726   :  { %3438 = vrcp.f32 %v2209_v27  ;;  %v2210_v22 = vadd.f32 1.0, %v3429_v59 }
 0x727   :  { %3440 = vrcp.f32 %v2207_v32 }
 0x72c   :  { %v3431_v2 = vpop.eup %3430 }
 0x72d   :  { %v3433_v4 = vpop.eup %3432  ;;  %v2227_v29 = vmul.f32 %v3431_v2, %v3425_v16 }
 0x72e   :  { %v3435_v1 = vpop.eup %3434 }
 0x72f   :  { %v3437_v31 = vpop.eup %3436  ;;  %v2225_v7 = vmul.f32 %v3435_v1, %v4354_v0 }
 0x730   :  { %v2228_v9 = vmul.f32 %v3437_v31, %v3433_v4  ;;  %v3439_v20 = vpop.eup %3438 }
 0x731   :  { %v4404_v14 = vadd.f32 %v2227_v29, %v2225_v7  ;;  %v2226_v62 = vmul.f32 %v3439_v20, %v4358_v18  ;;  %v3441_v21 = vpop.eup %3440 }
 0x733   :  { %3442 = vtanh.f32 %v4404_v14  ;;  %v4408_v5 = vadd.f32 %v2228_v9, %v2226_v62 }
 0x734   :  { %3444 = vrcp.f32 %v2210_v22 }
 0x735   :  { %3446 = vtanh.f32 %v4408_v5 }
 0x73d   :  { %v3443_v15 = vpop.eup %3442 }
 0x73e   :  { %v3445_v24 = vpop.eup %3444  ;;  %v2233_v0 = vmul.f32 %v3443_v15, %v3441_v21 }
 0x73f   :  { %v3447_v23 = vpop.eup %3446 }
 0x740   :  { %v2234_v61 = vmul.f32 %v3447_v23, %v3445_v24 }
 0x742   :  { %v2243_v12 = vpack.c.bf16 %v2234_v61, %v2233_v0  ;;  %v3209_v0 = vld [vmem:[#allocation12] sm:$0xff]   ;;  %v3210_v61 = vld [vmem:[#allocation12 + $0x48] sm:$0xff]  }
 0x744   :  { %2277 = vmatmul.mubr.bf16.vlgmr.msra.gmra.mrb[24].mxu0 %v2243_v12  ;;  %2320 = vmatmul.mubr.bf16.vlgmr.msra.gmra.mrb[24].mxu1 %v2243_v12  ;;  %v3211_v12 = vld [vmem:[#allocation12 + $0x8] sm:$0xff]  }
 0x745   :  { %2396 = vmatpush1.bf16.msra.mxu0 %v4201_v33  ;;  %2439 = vmatpush1.bf16.msra.mxu1 %v4204_v19 }
 0x746   :  { %2397 = vmatprep.subr.bf16.mxu0 %v4207_v34  ;;  %2440 = vmatprep.subr.bf16.mxu1 %v4210_v35 }
 0x747   :  { %2427 = vmatprep.mubr.bf16.mxu0 %v3703_v8  ;;  %2470 = vmatprep.mubr.bf16.mxu1 %v3703_v8 }
 0x749   :  { %2398 = vmatpush1.bf16.msra.mxu0 %v4215_v36  ;;  %2441 = vmatpush1.bf16.msra.mxu1 %v4218_v37 }
 0x74a   :  { %2399 = vmatprep.subr.bf16.mxu0 %v4221_v38  ;;  %2442 = vmatprep.subr.bf16.mxu1 %v4224_v10 }
 0x74d   :  { %2400 = vmatpush1.bf16.msra.mxu0 %v4227_v39  ;;  %2443 = vmatpush1.bf16.msra.mxu1 %v4230_v40 }
 0x74e   :  { %2401 = vmatprep.subr.bf16.mxu0 %v4233_v41  ;;  %2444 = vmatprep.subr.bf16.mxu1 %v4236_v42 }
 0x751   :  { %2402 = vmatpush1.bf16.msra.mxu0 %v4239_v43  ;;  %2445 = vmatpush1.bf16.msra.mxu1 %v4242_v44 }
 0x752   :  { %2403 = vmatprep.subr.bf16.mxu0 %v4245_v45  ;;  %2446 = vmatprep.subr.bf16.mxu1 %v4248_v28 }
 0x755   :  { %2404 = vmatpush1.bf16.msra.mxu0 %v4251_v46  ;;  %2447 = vmatpush1.bf16.msra.mxu1 %v4254_v47 }
 0x756   :  { %2405 = vmatprep.subr.bf16.mxu0 %v4257_v48  ;;  %2448 = vmatprep.subr.bf16.mxu1 %v4260_v50 }
 0x759   :  { %2406 = vmatpush1.bf16.msra.mxu0 %v4263_v51  ;;  %2449 = vmatpush1.bf16.msra.mxu1 %v4266_v52 }
 0x75a   :  { %2407 = vmatprep.subr.bf16.mxu0 %v4269_v53  ;;  %2450 = vmatprep.subr.bf16.mxu1 %v4272_v49 }
 0x75d   :  { %2408 = vmatpush1.bf16.msra.mxu0 %v4275_v54  ;;  %2451 = vmatpush1.bf16.msra.mxu1 %v4278_v55 }
 0x75e   :  { %2409 = vmatprep.subr.bf16.mxu0 %v4281_v56  ;;  %2452 = vmatprep.subr.bf16.mxu1 %v4284_v57 }
 0x761   :  { %2410 = vmatpush1.bf16.msra.mxu0 %v4287_v58  ;;  %2453 = vmatpush1.bf16.msra.mxu1 %v4290_v26 }
 0x817   :  { %v2278_v8 = vpop.f32.mrb[24].mxu0  ;;  %v2321_v33 = vpop.f32.mrb[24].mxu1 }
 0x818   :  { %v3026_v19 = vadd.f32 %v2278_v8, %v4063_v6  ;;  %v2280_v34 = vpop.f32.mrb[25].mxu0  ;;  %v2323_v35 = vpop.f32.mrb[25].mxu1  ;;  %v3058_v28 = vadd.f32 %v2321_v33, %v4079_v13  ;;  %v3212_v8 = vld [vmem:[#allocation12 + $0x50] sm:$0xff]  }
 0x819   :  { %v3027_v36 = vadd.f32 %v2280_v34, %v4067_v11  ;;  %v2282_v37 = vpop.f32.mrb[26].mxu0  ;;  %v2325_v38 = vpop.f32.mrb[26].mxu1  ;;  %v3059_v47 = vadd.f32 %v2323_v35, %v4075_v63  ;;  %v3213_v33 = vld [vmem:[#allocation12 + $0x10] sm:$0xff]   ;;  %v3215_v34 = vld [vmem:[#allocation12 + $0x18] sm:$0xff]   ;;  %v3216_v35 = vld [vmem:[#allocation12 + $0x60] sm:$0xff]  }
 0x81a   :  { %v2944_v10 = vmul.f32 -1.442695, %v3026_v19  ;;  %v3028_v39 = vadd.f32 %v2282_v37, %v4063_v6  ;;  %v2284_v40 = vpop.f32.mrb[27].mxu0  ;;  %v2327_v41 = vpop.f32.mrb[27].mxu1  ;;  %v3060_v46 = vadd.f32 %v2325_v38, %v4079_v13  ;;  %v2946_v48 = vmul.f32 -1.442695, %v3058_v28 }
 0x81b   :  { %v2945_v42 = vmul.f32 -1.442695, %v3027_v36  ;;  %v3029_v43 = vadd.f32 %v2284_v40, %v4067_v11  ;;  %v3061_v52 = vadd.f32 %v2327_v41, %v4075_v63  ;;  %v3214_v19 = vld [vmem:[#allocation12 + $0x58] sm:$0xff]   ;;  %v3217_v36 = vld [vmem:[#allocation12 + $0x20] sm:$0xff]   ;;  %v3221_v37 = vld [vmem:[#allocation12 + $0x30] sm:$0xff]  }
 0x81c   :  { %3448 = vpow2.f32 %v2944_v10  ;;  %v2947_v44 = vmul.f32 -1.442695, %v3028_v39  ;;  %v2949_v50 = vmul.f32 -1.442695, %v3060_v46  ;;  %v3222_v38 = vld [vmem:[#allocation12 + $0x78] sm:$0xff]  }
 0x81d   :  { %v2948_v45 = vmul.f32 -1.442695, %v3029_v43  ;;  %3450 = vpow2.f32 %v2945_v42  ;;  %v3223_v10 = vld [vmem:[#allocation12 + $0x38] sm:$0xff]  }
 0x81e   :  { %3452 = vpow2.f32 %v2947_v44 }
 0x81f   :  { %3454 = vpow2.f32 %v2948_v45 }
 0x820   :  { %3456 = vtanh.f32 %v3059_v47 }
 0x821   :  { %3458 = vpow2.f32 %v2946_v48 }
 0x822   :  { %3460 = vpow2.f32 %v2949_v50 }
 0x826   :  { %v3449_v51 = vpop.eup %3448 }
 0x827   :  { %v2356_v53 = vadd.f32 1.0, %v3449_v51  ;;  %v3451_v49 = vpop.eup %3450 }
 0x828   :  { %v3453_v54 = vpop.eup %3452  ;;  %v2357_v55 = vadd.f32 1.0, %v3451_v49 }
 0x829   :  { %3462 = vrcp.f32 %v2356_v53  ;;  %v2359_v56 = vadd.f32 1.0, %v3453_v54  ;;  %v3455_v57 = vpop.eup %3454 }
 0x82a   :  { %3464 = vtanh.f32 %v3061_v52  ;;  %v2360_v58 = vadd.f32 1.0, %v3455_v57  ;;  %v3457_v26 = vpop.eup %3456 }
 0x82b   :  { %3466 = vrcp.f32 %v2357_v55  ;;  %v3459_v18 = vpop.eup %3458 }
 0x82c   :  { %3468 = vrcp.f32 %v2359_v56  ;;  %v3461_v25 = vpop.eup %3460  ;;  %v2358_v4 = vadd.f32 1.0, %v3459_v18 }
 0x82d   :  { %3470 = vrcp.f32 %v2360_v58  ;;  %v2361_v7 = vadd.f32 1.0, %v3461_v25 }
 0x82e   :  { %3472 = vrcp.f32 %v2358_v4 }
 0x833   :  { %v3463_v27 = vpop.eup %3462 }
 0x834   :  { %v3465_v16 = vpop.eup %3464  ;;  %v2378_v17 = vmul.f32 %v3463_v27, %v3457_v26 }
 0x835   :  { %v3467_v59 = vpop.eup %3466 }
 0x836   :  { %v3469_v2 = vpop.eup %3468  ;;  %v2376_v29 = vmul.f32 %v3467_v59, %v4404_v14 }
 0x837   :  { %v2379_v1 = vmul.f32 %v3469_v2, %v3465_v16  ;;  %v3471_v31 = vpop.eup %3470 }
 0x838   :  { %v4452_v32 = vadd.f32 %v2378_v17, %v2376_v29  ;;  %v2377_v9 = vmul.f32 %v3471_v31, %v4408_v5  ;;  %v3473_v22 = vpop.eup %3472  ;;  %v3208_v5 = vld [vmem:[#allocation12 + $0x40] sm:$0xff]  }
 0x839   :  { %2980 = vmatprep.subr.bf16.mxu0 %v3208_v5 }
 0x83a   :  { %3474 = vtanh.f32 %v4452_v32  ;;  %v4456_v20 = vadd.f32 %v2379_v1, %v2377_v9 }
 0x83b   :  { %3476 = vrcp.f32 %v2361_v7 }
 0x83c   :  { %3478 = vtanh.f32 %v4456_v20 }
 0x844   :  { %v3475_v62 = vpop.eup %3474 }
 0x845   :  { %v3477_v21 = vpop.eup %3476  ;;  %v2384_v14 = vmul.f32 %v3475_v62, %v3473_v22 }
 0x846   :  { %v3479_v15 = vpop.eup %3478 }
 0x847   :  { %v2385_v24 = vmul.f32 %v3479_v15, %v3477_v21 }
 0x849   :  { %v2394_v23 = vpack.c.bf16 %v2385_v24, %v2384_v14 }
 0x84b   :  { %2428 = vmatmul.mubr.bf16.vlgmr.msra.gmra.mrb[28].mxu0 %v2394_v23  ;;  %2471 = vmatmul.mubr.bf16.vlgmr.msra.gmra.mrb[28].mxu1 %v2394_v23 }
 0x84c   :  { %2762 = vmatprep.mubr.bf16.mxu0 %v2594_v60  ;;  %2981 = vmatpush3.bf16.msra.mxu0 %v3209_v0  ;;  %v3220_v60 = vld [vmem:[#allocation12 + $0x70] sm:$0xff]  }
 0x84d   :  { %2982 = vmatprep.subr.bf16.mxu0 %v3210_v61 }
 0x850   :  { %2983 = vmatpush3.bf16.msra.mxu0 %v3211_v12 }
 0x851   :  { %2984 = vmatprep.subr.bf16.mxu0 %v3212_v8 }
 0x854   :  { %2985 = vmatpush3.bf16.msra.mxu0 %v3213_v33 }
 0x855   :  { %2986 = vmatprep.subr.bf16.mxu0 %v3214_v19 }
 0x858   :  { %2987 = vmatpush3.bf16.msra.mxu0 %v3215_v34  ;;  %v2962_v34 = vld [vmem:[%s4493_s6] ss:$0 sm:$0xff] }
 0x859   :  { %2988 = vmatprep.subr.bf16.mxu0 %v3216_v35 }
 0x85c   :  { %2989 = vmatpush3.bf16.msra.mxu0 %v3217_v36 }
 0x85d   :  { %2990 = vmatprep.subr.bf16.mxu0 %v3218_v3 }
 0x860   :  { %2991 = vmatpush3.bf16.msra.mxu0 %v3219_v30 }
 0x861   :  { %2992 = vmatprep.subr.bf16.mxu0 %v3220_v60 }
 0x864   :  { %2993 = vmatpush3.bf16.msra.mxu0 %v3221_v37 }
 0x865   :  { %2994 = vmatprep.subr.bf16.mxu0 %v3222_v38 }
 0x868   :  { %2995 = vmatpush3.bf16.msra.mxu0 %v3223_v10 }
 0x91e   :  { %v2429_v39 = vpop.f32.mrb[28].mxu0  ;;  %v2472_v40 = vpop.f32.mrb[28].mxu1 }
 0x91f   :  { %v3030_v41 = vadd.f32 %v2429_v39, %v4063_v6  ;;  %v2431_v42 = vpop.f32.mrb[29].mxu0  ;;  %v2474_v43 = vpop.f32.mrb[29].mxu1  ;;  %v3062_v54 = vadd.f32 %v2472_v40, %v4079_v13 }
 0x920   :  { %v3031_v44 = vadd.f32 %v2431_v42, %v4067_v11  ;;  %v2433_v45 = vpop.f32.mrb[30].mxu0  ;;  %v2476_v28 = vpop.f32.mrb[30].mxu1  ;;  %v3063_v56 = vadd.f32 %v2474_v43, %v4075_v63 }
 0x921   :  { %v2950_v46 = vmul.f32 -1.442695, %v3030_v41  ;;  %v3032_v47 = vadd.f32 %v2433_v45, %v4063_v6  ;;  %v2435_v48 = vpop.f32.mrb[31].mxu0  ;;  %v2478_v50 = vpop.f32.mrb[31].mxu1  ;;  %v3064_v55 = vadd.f32 %v2476_v28, %v4079_v13  ;;  %v2952_v57 = vmul.f32 -1.442695, %v3062_v54 }
 0x922   :  { %v2951_v51 = vmul.f32 -1.442695, %v3031_v44  ;;  %v3033_v52 = vadd.f32 %v2435_v48, %v4067_v11  ;;  %v3065_v26 = vadd.f32 %v2478_v50, %v4075_v63 }
 0x923   :  { %3480 = vpow2.f32 %v2950_v46  ;;  %v2953_v53 = vmul.f32 -1.442695, %v3032_v47  ;;  %v2955_v58 = vmul.f32 -1.442695, %v3064_v55 }
 0x924   :  { %v2954_v49 = vmul.f32 -1.442695, %v3033_v52  ;;  %3482 = vpow2.f32 %v2951_v51 }
 0x925   :  { %3484 = vpow2.f32 %v2953_v53 }
 0x926   :  { %3486 = vpow2.f32 %v2954_v49 }
 0x927   :  { %3488 = vtanh.f32 %v3063_v56 }
 0x928   :  { %3490 = vpow2.f32 %v2952_v57 }
 0x929   :  { %3492 = vpow2.f32 %v2955_v58 }
 0x92d   :  { %v3481_v6 = vpop.eup %3480 }
 0x92e   :  { %v2507_v18 = vadd.f32 1.0, %v3481_v6  ;;  %v3483_v11 = vpop.eup %3482 }
 0x92f   :  { %v3485_v25 = vpop.eup %3484  ;;  %v2508_v27 = vadd.f32 1.0, %v3483_v11 }
 0x930   :  { %3494 = vrcp.f32 %v2507_v18  ;;  %v2510_v16 = vadd.f32 1.0, %v3485_v25  ;;  %v3487_v17 = vpop.eup %3486 }
 0x931   :  { %3496 = vtanh.f32 %v3065_v26  ;;  %v2511_v13 = vadd.f32 1.0, %v3487_v17  ;;  %v3489_v59 = vpop.eup %3488 }
 0x932   :  { %3498 = vrcp.f32 %v2508_v27  ;;  %v3491_v2 = vpop.eup %3490 }
 0x933   :  { %3500 = vrcp.f32 %v2510_v16  ;;  %v3493_v4 = vpop.eup %3492  ;;  %v2509_v7 = vadd.f32 1.0, %v3491_v2 }
 0x934   :  { %3502 = vrcp.f32 %v2511_v13  ;;  %v2512_v14 = vadd.f32 1.0, %v3493_v4 }
 0x935   :  { %3504 = vrcp.f32 %v2509_v7 }
 0x93a   :  { %v3495_v29 = vpop.eup %3494 }
 0x93b   :  { %v3497_v1 = vpop.eup %3496  ;;  %v2529_v63 = vmul.f32 %v3495_v29, %v3489_v59 }
 0x93c   :  { %v3499_v31 = vpop.eup %3498 }
 0x93d   :  { %v3501_v9 = vpop.eup %3500  ;;  %v2527_v22 = vmul.f32 %v3499_v31, %v4452_v32 }
 0x93e   :  { %v2530_v62 = vmul.f32 %v3501_v9, %v3497_v1  ;;  %v3503_v21 = vpop.eup %3502 }
 0x93f   :  { %v2531_v15 = vadd.f32 %v2529_v63, %v2527_v22  ;;  %v2528_v24 = vmul.f32 %v3503_v21, %v4456_v20  ;;  %v3505_v5 = vpop.eup %3504 }
 0x941   :  { %3506 = vtanh.f32 %v2531_v15  ;;  %v2532_v23 = vadd.f32 %v2530_v62, %v2528_v24 }
 0x942   :  { %3508 = vrcp.f32 %v2512_v14 }
 0x943   :  { %3510 = vtanh.f32 %v2532_v23 }
 0x94b   :  { %v3507_v0 = vpop.eup %3506 }
 0x94c   :  { %v2535_v61 = vmul.f32 %v3507_v0, %v3505_v5  ;;  %v3509_v12 = vpop.eup %3508 }
 0x94d   :  { %v3511_v8 = vpop.eup %3510 }
 0x94e   :  { %v2536_v33 = vmul.f32 %v3511_v8, %v3509_v12 }
 0x950   :  { %v2593_v19 = vpack.c.bf16 %v2536_v33, %v2535_v61 }
 0x952   :  { %2763 = vmatmul.mubr.bf16.vlgmr.msra.gmra.mrb[64].mxu0 %v2593_v19 }
 0xa25   :  { %v2996_v32 = vpop.f32.mrb[64].mxu0 }
 0xa26   :  { %v2997_v35 = vpop.f32.mrb[65].mxu0 }
 0xa27   :  { %v2998_v36 = vadd.f32 %v2997_v35, %v2996_v32  ;;  %v2999_v20 = vpop.f32.mrb[66].mxu0 }
 0xa28   :  { %v3000_v3 = vpop.f32.mrb[67].mxu0 }
 0xa29   :  { %v2765_v30 = vadd.f32 %v2998_v36, %v2962_v34  ;;  %v3001_v60 = vadd.f32 %v3000_v3, %v2999_v20 }
 0xa2b   :  { %2771 = vst [vmem:[#allocation13] sm:$0xff] %v2765_v30  ;;  %v2768_v37 = vadd.f32 %v3001_v60, %v2962_v34 }
 0xa2d   :  { %2772 = vst [vmem:[#allocation13 + $0x8] sm:$0xff] %v2768_v37 }
 0xa2e   :  { %3655 = shalt.err (!%p3652_p3)
}
 0xa2f   :  { %s3656_s3 = scalar_lea.hbm %s4494_s7, 256 }
 0xa30   :  { %p3657_p4 = scmp.ne.s32.totalorder %s4494_s7, %s3656_s3  ;;  %p3660_p5 = scmp.lt.u32.totalorder %s3656_s3, %s4494_s7 }
 0xa32   :  { %p3662_p6 = pnand %p3660_p5, %p3657_p4 }
 0xa34   :  { %3665 = shalt.err (!%p3662_p6)
}
 0xa35   :  { %s3705_s29 = smov 128   ;;  %s3706_s5 = smov 8  }
 0xa36   :  { %2784 = dma.vmem_to_hbm [thread:$0]  %s2779_s23, 256, %s4494_s7, [#allocation7], %s3705_s29, %s3705_s29, %s3706_s5  }
 0xa37   :  { %3682 = dma.done.wait [#allocation7], 256  }
 0xa38   :  { %3683 = vsyncadd [#allocation7], 4294967040 }
 0xa39   :  { %2788 = vsyncpa [#allocation6], 1 }
 0xa3a   :  { %2789 = vsyncpa [#allocation11], 1 }
 0xa3b   :  { %2790 = vsyncpa [#allocation7], 1 }
 0xa3c   :  { %2791 = vsyncpa [#allocation8], 1 }
 0xa3d   :  { %2792 = vsyncmov [#allocation4] }
 0xa40   :  { %s2793_s9 = vpop.sfrf %2792 }
 0xa41   :  { %p2979_p7 = scmp.ne.s32.totalorder %s2793_s9, 0 }
 0xa43   :  { %2797 = shalt.err (%p2979_p7)  }

</bundles_post_ra>
